<compile_context>
chip_gen: v6e
topology: v6e:2x2x1
jax: 0.10.0
libtpu: 0.0.40
codegen_flags: <defaults>
</compile_context>

<pallas_src>
import jax
import jax.numpy as jnp
import numpy as np
from jax import lax
from jax.experimental import pallas as pl
from jax.experimental.pallas import tpu as pltpu

KH = KW = 3
BN_EPS = 3.0   # torch.nn.BatchNorm2d(64, 3) -> eps = 3.0
CP = 128       # Cout padded to full lane width


def conv_bn_silu_kernel(p_ref, w_ref, prm_ref, o_ref):
    # p_ref:   (M, K)   im2col patches, K ordered (dy, dx, cin)
    # w_ref:   (K, CP)  conv weights, same K ordering, Cout zero-padded to CP
    # prm_ref: (2, CP)  rows = [bn gamma, bn beta]
    # o_ref:   (M, CP)
    M = p_ref.shape[0]

    # --- Conv2d (valid, stride 1) as a single MXU matmul over K = KH*KW*Cin ---
    # Conv bias intentionally omitted: a per-channel constant is exactly
    # cancelled by the train-mode BatchNorm mean subtraction below.
    y = jnp.dot(p_ref[...], w_ref[...], preferred_element_type=jnp.float32)

    # --- BatchNorm2d (train-mode batch stats, biased var, eps=3), two-pass ---
    inv_m = 1.0 / M
    mean = jnp.sum(y, axis=0, keepdims=True) * inv_m          # (1, CP)
    yc = y - mean
    var = jnp.sum(yc * yc, axis=0, keepdims=True) * inv_m     # biased variance
    scale = prm_ref[0:1, :] * lax.rsqrt(var + BN_EPS)
    yb = yc * scale + prm_ref[1:2, :]

    # --- SiLU ---
    o_ref[...] = (yb * (1.0 / (1.0 + jnp.exp(-yb)))).astype(o_ref.dtype)


@jax.jit
def test_module_forward(x_nchw, w_oihw, bias, gamma, beta):
    del bias  # exactly cancelled by BN batch-mean subtraction (forward unchanged)
    N, Cin, H, W = x_nchw.shape
    Cout = w_oihw.shape[0]
    Ho, Wo = H - KH + 1, W - KW + 1
    M = N * Ho * Wo
    K = KH * KW * Cin

    # im2col (K ordered (dy, dx, cin)); fused by XLA (and eligible for input
    # fusion directly into the pallas_call via allow_input_fusion).
    x = jnp.transpose(x_nchw, (0, 2, 3, 1))                       # NCHW -> NHWC
    patches = jnp.concatenate(
        [x[:, dy:dy + Ho, dx:dx + Wo, :] for dy in range(KH) for dx in range(KW)],
        axis=-1).reshape(M, K)

    # weights with matching K ordering, Cout zero-padded to 128 lanes
    w = jnp.transpose(w_oihw, (2, 3, 1, 0)).reshape(K, Cout)      # (dy,dx,cin) x Cout
    w = jnp.pad(w, ((0, 0), (0, CP - Cout)))
    params = jnp.stack([
        jnp.pad(gamma, (0, CP - Cout)),
        jnp.pad(beta,  (0, CP - Cout)),
    ], axis=0)                                                    # (2, CP)

    out2d = pl.pallas_call(
        conv_bn_silu_kernel,
        out_shape=jax.ShapeDtypeStruct((M, CP), jnp.float32),
        grid=(1,),
        in_specs=[
            pl.BlockSpec((M, K), lambda i: (0, 0)),
            pl.BlockSpec((K, CP), lambda i: (0, 0)),
            pl.BlockSpec((2, CP), lambda i: (0, 0)),
        ],
        out_specs=pl.BlockSpec((M, CP), lambda i: (0, 0)),
        compiler_params=pltpu.CompilerParams(
            dimension_semantics=("arbitrary",),
            allow_input_fusion=[True, False, False],
        ),
    )(patches, w, params)

    out = out2d[:, :Cout].reshape(N, Ho, Wo, Cout)
    return jnp.transpose(out, (0, 3, 1, 2))                       # NHWC -> NCHW


@jax.jit
def reference_forward(x_nchw, w_oihw, bias, gamma, beta):
    x = jnp.transpose(x_nchw, (0, 2, 3, 1))
    w = jnp.transpose(w_oihw, (2, 3, 1, 0))
    y = lax.conv_general_dilated(x, w, (1, 1), 'VALID',
                                 dimension_numbers=('NHWC', 'HWIO', 'NHWC'))
    y = y + bias.reshape(1, 1, 1, -1)
    m = jnp.mean(y, axis=(0, 1, 2), keepdims=True)
    v = jnp.mean((y - m) ** 2, axis=(0, 1, 2), keepdims=True)
    y = (y - m) * lax.rsqrt(v + BN_EPS) * gamma.reshape(1, 1, 1, -1) \
        + beta.reshape(1, 1, 1, -1)
    y = jax.nn.silu(y)
    return jnp.transpose(y, (0, 3, 1, 2))


if __name__ == "__main__":
    key = jax.random.PRNGKey(0)
    ks = jax.random.split(key, 5)

    N, Cin, H, W = 2, 32, 16, 16
    Cout = 64

    x = jax.random.normal(ks[0], (N, Cin, H, W), jnp.float32)
    w = jax.random.normal(ks[1], (Cout, Cin, KH, KW), jnp.float32) / np.sqrt(Cin * KH * KW)
    bias = 0.1 * jax.random.normal(ks[2], (Cout,), jnp.float32)
    gamma = 1.0 + 0.1 * jax.random.normal(ks[3], (Cout,), jnp.float32)
    beta = 0.1 * jax.random.normal(ks[4], (Cout,), jnp.float32)

    out = test_module_forward(x, w, bias, gamma, beta)
    out = jax.block_until_ready(out)

    assert out.shape == (N, Cout, H - KH + 1, W - KW + 1), out.shape
    ref = reference_forward(x, w, bias, gamma, beta)
    np.testing.assert_allclose(np.asarray(out), np.asarray(ref), rtol=1e-4, atol=1e-4)
    print("KERNEL_OK")
</pallas_src>

<mosaic_0001>
module attributes {stable_mosaic.version = 11 : i64} {
  func.func @conv_bn_silu_kernel(%arg0: i32, %arg1: memref<392x288xf32, #tpu.memory_space<vmem>>, %arg2: memref<288x128xf32, #tpu.memory_space<vmem>>, %arg3: memref<2x128xf32, #tpu.memory_space<vmem>>, %arg4: memref<392x128xf32, #tpu.memory_space<vmem>>) attributes {dimension_semantics = [#tpu.dimension_semantics<arbitrary>], iteration_bounds = array<i64: 1>, scalar_prefetch = 0 : i64, scratch_operands = 0 : i64, tpu.core_type = #tpu.core_type<tc>, window_params = [{pipeline_mode = #tpu.pipeline_mode<synchronous>, transform_indices = @transform_0, window_bounds = array<i64: 392, 288>}, {pipeline_mode = #tpu.pipeline_mode<synchronous>, transform_indices = @transform_1, window_bounds = array<i64: 288, 128>}, {pipeline_mode = #tpu.pipeline_mode<synchronous>, transform_indices = @transform_2, window_bounds = array<i64: 2, 128>}, {pipeline_mode = #tpu.pipeline_mode<synchronous>, transform_indices = @transform_3, window_bounds = array<i64: 392, 128>}]} {
    %c0 = arith.constant 0 : index
    %c0_0 = arith.constant 0 : index
    %0 = vector.load %arg1[%c0, %c0_0] : memref<392x288xf32, #tpu.memory_space<vmem>>, vector<392x288xf32>
    %c0_1 = arith.constant 0 : index
    %c0_2 = arith.constant 0 : index
    %1 = vector.load %arg2[%c0_1, %c0_2] : memref<288x128xf32, #tpu.memory_space<vmem>>, vector<288x128xf32>
    %cst = arith.constant dense<0.000000e+00> : vector<392x128xf32>
    %2 = tpu.matmul %0, %1, %cst {dimension_numbers = #tpu.dot_dimension_numbers<[1], [0], [0], [1], [0, 0, 1, 1], [], []>} : vector<392x288xf32>, vector<288x128xf32>, vector<392x128xf32> -> vector<392x128xf32>
    %cst_3 = arith.constant dense<0.000000e+00> : vector<128xf32>
    %3 = vector.multi_reduction <add>, %2, %cst_3 [0] : vector<392x128xf32> to vector<128xf32>
    %4 = vector.shape_cast %3 : vector<128xf32> to vector<1x128xf32>
    %cst_4 = arith.constant 0.00255102036 : f32
    %5 = vector.broadcast %cst_4 : f32 to vector<1x128xf32>
    %6 = arith.mulf %4, %5 : vector<1x128xf32>
    %7 = vector.broadcast %6 : vector<1x128xf32> to vector<392x128xf32>
    %8 = arith.subf %2, %7 : vector<392x128xf32>
    %9 = arith.mulf %8, %8 : vector<392x128xf32>
    %cst_5 = arith.constant dense<0.000000e+00> : vector<128xf32>
    %10 = vector.multi_reduction <add>, %9, %cst_5 [0] : vector<392x128xf32> to vector<128xf32>
    %11 = vector.shape_cast %10 : vector<128xf32> to vector<1x128xf32>
    %cst_6 = arith.constant 0.00255102036 : f32
    %12 = vector.broadcast %cst_6 : f32 to vector<1x128xf32>
    %13 = arith.mulf %11, %12 : vector<1x128xf32>
    %c0_7 = arith.constant 0 : index
    %c0_8 = arith.constant 0 : index
    %14 = vector.load %arg3[%c0_7, %c0_8] : memref<2x128xf32, #tpu.memory_space<vmem>>, vector<1x128xf32>
    %cst_9 = arith.constant 3.000000e+00 : f32
    %15 = vector.broadcast %cst_9 : f32 to vector<1x128xf32>
    %16 = arith.addf %13, %15 : vector<1x128xf32>
    %17 = math.rsqrt %16 : vector<1x128xf32>
    %18 = arith.mulf %14, %17 : vector<1x128xf32>
    %19 = vector.broadcast %18 : vector<1x128xf32> to vector<392x128xf32>
    %20 = arith.mulf %8, %19 : vector<392x128xf32>
    %c1 = arith.constant 1 : index
    %c0_10 = arith.constant 0 : index
    %21 = vector.load %arg3[%c1, %c0_10] : memref<2x128xf32, #tpu.memory_space<vmem>>, vector<1x128xf32>
    %22 = vector.broadcast %21 : vector<1x128xf32> to vector<392x128xf32>
    %23 = arith.addf %20, %22 : vector<392x128xf32>
    %cst_11 = arith.constant 0.000000e+00 : f32
    %24 = vector.broadcast %cst_11 : f32 to vector<392x128xf32>
    %25 = arith.subf %24, %23 : vector<392x128xf32>
    %26 = math.exp %25 : vector<392x128xf32>
    %cst_12 = arith.constant 1.000000e+00 : f32
    %27 = vector.broadcast %cst_12 : f32 to vector<392x128xf32>
    %28 = arith.addf %27, %26 : vector<392x128xf32>
    %cst_13 = arith.constant 1.000000e+00 : f32
    %29 = vector.broadcast %cst_13 : f32 to vector<392x128xf32>
    %30 = arith.divf %29, %28 : vector<392x128xf32>
    %31 = arith.mulf %23, %30 : vector<392x128xf32>
    %c0_14 = arith.constant 0 : index
    %c0_15 = arith.constant 0 : index
    %32 = vector.load %arg4[%c0_14, %c0_15] : memref<392x128xf32, #tpu.memory_space<vmem>>, vector<392x128xf32>
    tpu.vector_store %arg4[%c0_14, %c0_15], %31 {strides = array<i32>} : memref<392x128xf32, #tpu.memory_space<vmem>>, vector<392x128xf32>,
    return
  }
  func.func @transform_0(%arg0: i32) -> (i32, i32) {
    %c0_i32 = arith.constant 0 : i32
    %c0_i32_0 = arith.constant 0 : i32
    %c0_i32_1 = arith.constant 0 : i32
    return %c0_i32, %c0_i32_0 : i32, i32
  }
  func.func @transform_1(%arg0: i32) -> (i32, i32) {
    %c0_i32 = arith.constant 0 : i32
    %c0_i32_0 = arith.constant 0 : i32
    %c0_i32_1 = arith.constant 0 : i32
    return %c0_i32, %c0_i32_0 : i32, i32
  }
  func.func @transform_2(%arg0: i32) -> (i32, i32) {
    %c0_i32 = arith.constant 0 : i32
    %c0_i32_0 = arith.constant 0 : i32
    %c0_i32_1 = arith.constant 0 : i32
    return %c0_i32, %c0_i32_0 : i32, i32
  }
  func.func @transform_3(%arg0: i32) -> (i32, i32) {
    %c0_i32 = arith.constant 0 : i32
    %c0_i32_0 = arith.constant 0 : i32
    %c0_i32_1 = arith.constant 0 : i32
    return %c0_i32, %c0_i32_0 : i32, i32
  }
}

</mosaic_0001>

<bundles_post_ra>
// kernel: test_module_forward.1
= control target key start
LH: loop header
LB: loop body
LE: loop exit
PB: predicated region body
PF: predicated region fallthrough
CT: control target
= control target key end

     0   :  { %v2138_v0 = vmov 0.0   ;;  %vm2139_vm0 = vmmov 0   ;;  %vm197_vm1 = vcmask 261120   ;;  %s4140_s1 = inlined_call_operand.vmem [shape: f32[288,128], index: 1, kind: input, shape index: {}]   ;;  %s4141_s0 = inlined_call_operand.vmem [shape: f32[392,288], index: 0, kind: input, shape index: {}]   ;;  %s4142_s2 = inlined_call_operand.vmem [shape: f32[2,128], index: 2, kind: input, shape index: {}]   ;;  %s4143_s3 = inlined_call_operand.vmem [shape: f32[392,128], index: 3, kind: output, shape index: {}]  }
   0x1   :  { %345 = vmatprep.subr.mxu0 %v2138_v0  ;;  %v176_v1 = vld [vmem:[%s4140_s1 + $0x78] sm:$0xff]  ;;  %v175_v2 = vld [vmem:[%s4140_s1 + $0x70] sm:$0xff]  ;;  %1783 = vmatprep.subr.mxu1 %v2138_v0  ;;  %v174_v3 = vld [vmem:[%s4140_s1 + $0x68] sm:$0xff] }
   0x2   :  { %346 = vmatpush1.msra.mxu0 %v176_v1  ;;  %1791 = vmatprep.mubr.msk.f32.mxu1 %vm2139_vm0, %v2138_v0  ;;  %v173_v4 = vld [vmem:[%s4140_s1 + $0x60] sm:$0xff]  ;;  %v172_v5 = vld [vmem:[%s4140_s1 + $0x58] sm:$0xff]  ;;  %v171_v6 = vld [vmem:[%s4140_s1 + $0x50] sm:$0xff] }
   0x3   :  { %347 = vmatprep.subr.mxu0 %v2138_v0  ;;  %v196_v7 = vld [vmem:[%s4140_s1 + $0x118] sm:$0xff]  ;;  %v170_v8 = vld [vmem:[%s4140_s1 + $0x48] sm:$0xff]  ;;  %v195_v9 = vld [vmem:[%s4140_s1 + $0x110] sm:$0xff] }
   0x4   :  { %348 = vmatpush1.msra.mxu0 %v175_v2  ;;  %1784 = vmatpush3.msra.mxu1 %v196_v7  ;;  %v194_v10 = vld [vmem:[%s4140_s1 + $0x108] sm:$0xff]  ;;  %v169_v11 = vld [vmem:[%s4140_s1 + $0x40] sm:$0xff]  ;;  %v168_v13 = vld [vmem:[%s4140_s1 + $0x38] sm:$0xff] }
   0x5   :  { %349 = vmatprep.subr.mxu0 %v2138_v0  ;;  %1785 = vmatprep.subr.mxu1 %v2138_v0  ;;  %v193_v12 = vld [vmem:[%s4140_s1 + $0x100] sm:$0xff]  ;;  %v16_v14 = vld [vmem:[%s4141_s0 + $0x10] sm:$0xff]  ;;  %v15_v15 = vld [vmem:[%s4141_s0 + $0x8] sm:$0xff] }
   0x6   :  { %350 = vmatpush1.msra.mxu0 %v174_v3  ;;  %1786 = vmatpush3.msra.mxu1 %v195_v9  ;;  %v167_v16 = vld [vmem:[%s4140_s1 + $0x30] sm:$0xff]  ;;  %v166_v17 = vld [vmem:[%s4140_s1 + $0x28] sm:$0xff]  ;;  %v165_v19 = vld [vmem:[%s4140_s1 + $0x20] sm:$0xff] }
   0x7   :  { %351 = vmatprep.subr.mxu0 %v2138_v0  ;;  %1787 = vmatprep.subr.mxu1 %v2138_v0  ;;  %v19_v18 = vld [vmem:[%s4141_s0 + $0x28] sm:$0xff]  ;;  %v164_v20 = vld [vmem:[%s4140_s1 + $0x18] sm:$0xff]  ;;  %v22_v21 = vld [vmem:[%s4141_s0 + $0x40] sm:$0xff] }
   0x8   :  { %352 = vmatpush1.msra.mxu0 %v173_v4  ;;  %1788 = vmatpush3.msra.mxu1 %v194_v10  ;;  %v163_v22 = vld [vmem:[%s4140_s1 + $0x10] sm:$0xff]  ;;  %v162_v23 = vld [vmem:[%s4140_s1 + $0x8] sm:$0xff]  ;;  %v25_v24 = vld [vmem:[%s4141_s0 + $0x58] sm:$0xff] }
   0x9   :  { %353 = vmatprep.subr.mxu0 %v2138_v0  ;;  %1789 = vmatprep.subr.mxu1 %v2138_v0  ;;  %v161_v25 = vld [vmem:[%s4140_s1] sm:$0xff]  ;;  %v192_v26 = vld [vmem:[%s4140_s1 + $0xf8] sm:$0xff]  ;;  %v28_v27 = vld [vmem:[%s4141_s0 + $0x70] sm:$0xff] }
   0xa   :  { %354 = vmatpush1.msra.mxu0 %v172_v5  ;;  %1790 = vmatpush3.msra.mxu1 %v193_v12  ;;  %v191_v28 = vld [vmem:[%s4140_s1 + $0xf0] sm:$0xff]  ;;  %v190_v29 = vld [vmem:[%s4140_s1 + $0xe8] sm:$0xff]  ;;  %v189_v31 = vld [vmem:[%s4140_s1 + $0xe0] sm:$0xff] }
   0xb   :  { %355 = vmatprep.subr.mxu0 %v2138_v0  ;;  %1792 = vmatmul.mubr.msk.f32.vlgmr.msra.gmra.mxu1 %vm197_vm1, %v16_v14  ;;  %v31_v30 = vld [vmem:[%s4141_s0 + $0x88] sm:$0xff]  ;;  %v188_v32 = vld [vmem:[%s4140_s1 + $0xd8] sm:$0xff]  ;;  %v34_v33 = vld [vmem:[%s4141_s0 + $0xa0] sm:$0xff] }
   0xc   :  { %356 = vmatpush1.msra.mxu0 %v171_v6  ;;  %409 = vmatprep.mubr.f32.mxu0 %v15_v15  ;;  %v187_v34 = vld [vmem:[%s4140_s1 + $0xd0] sm:$0xff]  ;;  %v186_v35 = vld [vmem:[%s4140_s1 + $0xc8] sm:$0xff]  ;;  %v37_v36 = vld [vmem:[%s4141_s0 + $0xb8] sm:$0xff] }
   0xd   :  { %357 = vmatprep.subr.mxu0 %v2138_v0  ;;  %1794 = vmatprep.mubr.msk.f32.mxu1 %vm2139_vm0, %v2138_v0  ;;  %v185_v37 = vld [vmem:[%s4140_s1 + $0xc0] sm:$0xff]  ;;  %v184_v38 = vld [vmem:[%s4140_s1 + $0xb8] sm:$0xff]  ;;  %v40_v39 = vld [vmem:[%s4141_s0 + $0xd0] sm:$0xff] }
   0xe   :  { %358 = vmatpush1.msra.mxu0 %v170_v8  ;;  %v183_v40 = vld [vmem:[%s4140_s1 + $0xb0] sm:$0xff]  ;;  %v182_v41 = vld [vmem:[%s4140_s1 + $0xa8] sm:$0xff]  ;;  %v181_v43 = vld [vmem:[%s4140_s1 + $0xa0] sm:$0xff] }
   0xf   :  { %359 = vmatprep.subr.mxu0 %v2138_v0  ;;  %1795 = vmatmul.mubr.msk.f32.gmra.mxu1 %vm197_vm1, %v19_v18  ;;  %v43_v42 = vld [vmem:[%s4141_s0 + $0xe8] sm:$0xff]  ;;  %v180_v44 = vld [vmem:[%s4140_s1 + $0x98] sm:$0xff]  ;;  %v46_v45 = vld [vmem:[%s4141_s0 + $0x100] sm:$0xff] }
  0x10   :  { %360 = vmatpush1.msra.mxu0 %v169_v11  ;;  %1797 = vmatprep.mubr.msk.f32.mxu1 %vm2139_vm0, %v2138_v0  ;;  %v179_v46 = vld [vmem:[%s4140_s1 + $0x90] sm:$0xff]  ;;  %v178_v47 = vld [vmem:[%s4140_s1 + $0x88] sm:$0xff]  ;;  %v49_v48 = vld [vmem:[%s4141_s0 + $0x118] sm:$0xff] }
  0x11   :  { %361 = vmatprep.subr.mxu0 %v2138_v0  ;;  %v177_v49 = vld [vmem:[%s4140_s1 + $0x80] sm:$0xff]  ;;  %v52_v52 = vld [vmem:[%s4141_s0 + $0x130] sm:$0xff]  ;;  %v17_v53 = vld [vmem:[%s4141_s0 + $0x18] sm:$0xff] }
  0x12   :  { %362 = vmatpush1.msra.mxu0 %v168_v13  ;;  %v14_v50 = vld [vmem:[%s4141_s0] sm:$0xff]  ;;  %v21_v54 = vld [vmem:[%s4141_s0 + $0x38] sm:$0xff]  ;;  %v55_v55 = vld [vmem:[%s4141_s0 + $0x148] sm:$0xff] }
  0x13   :  { %363 = vmatprep.subr.mxu0 %v2138_v0  ;;  %1798 = vmatmul.mubr.msk.f32.gmra.mxu1 %vm197_vm1, %v22_v21  ;;  %v18_v51 = vld [vmem:[%s4141_s0 + $0x20] sm:$0xff]  ;;  %v20_v56 = vld [vmem:[%s4141_s0 + $0x30] sm:$0xff]  ;;  %v23_v59 = vld [vmem:[%s4141_s0 + $0x48] sm:$0xff] }
  0x14   :  { %364 = vmatpush1.msra.mxu0 %v167_v16  ;;  %1800 = vmatprep.mubr.msk.f32.mxu1 %vm2139_vm0, %v2138_v0  ;;  %v24_v57 = vld [vmem:[%s4141_s0 + $0x50] sm:$0xff]  ;;  %v58_v58 = vld [vmem:[%s4141_s0 + $0x160] sm:$0xff]  ;;  %v27_v60 = vld [vmem:[%s4141_s0 + $0x68] sm:$0xff] }
  0x15   :  { %365 = vmatprep.subr.mxu0 %v2138_v0  ;;  %v61_v61 = vld [vmem:[%s4141_s0 + $0x178] sm:$0xff]  ;;  %v26_v62 = vld [vmem:[%s4141_s0 + $0x60] sm:$0xff]  ;;  %v64_v1 = vld [vmem:[%s4141_s0 + $0x190] sm:$0xff] }
  0x16   :  { %366 = vmatpush1.msra.mxu0 %v166_v17  ;;  %v30_v63 = vld [vmem:[%s4141_s0 + $0x80] sm:$0xff]  ;;  %v29_v2 = vld [vmem:[%s4141_s0 + $0x78] sm:$0xff]  ;;  %v67_v4 = vld [vmem:[%s4141_s0 + $0x1a8] sm:$0xff] }
  0x17   :  { %367 = vmatprep.subr.mxu0 %v2138_v0  ;;  %1801 = vmatmul.mubr.msk.f32.gmra.mxu1 %vm197_vm1, %v25_v24  ;;  %v33_v3 = vld [vmem:[%s4141_s0 + $0x98] sm:$0xff]  ;;  %v32_v5 = vld [vmem:[%s4141_s0 + $0x90] sm:$0xff]  ;;  %v70_v7 = vld [vmem:[%s4141_s0 + $0x1c0] sm:$0xff] }
  0x18   :  { %368 = vmatpush1.msra.mxu0 %v165_v19  ;;  %1803 = vmatprep.mubr.msk.f32.mxu1 %vm2139_vm0, %v2138_v0  ;;  %v36_v6 = vld [vmem:[%s4141_s0 + $0xb0] sm:$0xff]  ;;  %v35_v8 = vld [vmem:[%s4141_s0 + $0xa8] sm:$0xff]  ;;  %v73_v10 = vld [vmem:[%s4141_s0 + $0x1d8] sm:$0xff] }
  0x19   :  { %369 = vmatprep.subr.mxu0 %v2138_v0  ;;  %v39_v9 = vld [vmem:[%s4141_s0 + $0xc8] sm:$0xff]  ;;  %v38_v11 = vld [vmem:[%s4141_s0 + $0xc0] sm:$0xff]  ;;  %v76_v13 = vld [vmem:[%s4141_s0 + $0x1f0] sm:$0xff] }
  0x1a   :  { %370 = vmatpush1.msra.mxu0 %v164_v20  ;;  %v42_v12 = vld [vmem:[%s4141_s0 + $0xe0] sm:$0xff]  ;;  %v41_v14 = vld [vmem:[%s4141_s0 + $0xd8] sm:$0xff]  ;;  %v79_v16 = vld [vmem:[%s4141_s0 + $0x208] sm:$0xff] }
  0x1b   :  { %371 = vmatprep.subr.mxu0 %v2138_v0  ;;  %1804 = vmatmul.mubr.msk.f32.gmra.mxu1 %vm197_vm1, %v28_v27  ;;  %v45_v15 = vld [vmem:[%s4141_s0 + $0xf8] sm:$0xff]  ;;  %v44_v17 = vld [vmem:[%s4141_s0 + $0xf0] sm:$0xff]  ;;  %v82_v19 = vld [vmem:[%s4141_s0 + $0x220] sm:$0xff] }
  0x1c   :  { %372 = vmatpush1.msra.mxu0 %v163_v22  ;;  %1806 = vmatprep.mubr.msk.f32.mxu1 %vm2139_vm0, %v2138_v0  ;;  %v48_v18 = vld [vmem:[%s4141_s0 + $0x110] sm:$0xff]  ;;  %v47_v20 = vld [vmem:[%s4141_s0 + $0x108] sm:$0xff]  ;;  %v85_v22 = vld [vmem:[%s4141_s0 + $0x238] sm:$0xff] }
  0x1d   :  { %373 = vmatprep.subr.mxu0 %v2138_v0  ;;  %v51_v21 = vld [vmem:[%s4141_s0 + $0x128] sm:$0xff]  ;;  %v54_v24 = vld [vmem:[%s4141_s0 + $0x140] sm:$0xff]  ;;  %v57_v27 = vld [vmem:[%s4141_s0 + $0x158] sm:$0xff] }
  0x1e   :  { %374 = vmatpush1.msra.mxu0 %v162_v23  ;;  %v50_v23 = vld [vmem:[%s4141_s0 + $0x120] sm:$0xff] }
  0x1f   :  { %375 = vmatprep.subr.mxu0 %v2138_v0  ;;  %1807 = vmatmul.mubr.msk.f32.gmra.mxu1 %vm197_vm1, %v31_v30  ;;  %v60_v30 = vld [vmem:[%s4141_s0 + $0x170] sm:$0xff] }
  0x20   :  { %376 = vmatpush1.msra.mxu0 %v161_v25  ;;  %1809 = vmatprep.mubr.msk.f32.mxu1 %vm2139_vm0, %v2138_v0  ;;  %v88_v25 = vld [vmem:[%s4141_s0 + $0x250] sm:$0xff] }
  0x21   :  { %377 = vmatprep.subr.mxu0 %v2138_v0 }
  0x22   :  { %378 = vmatpush2.msra.mxu0 %v192_v26  ;;  %v53_v26 = vld [vmem:[%s4141_s0 + $0x138] sm:$0xff] }
  0x23   :  { %379 = vmatprep.subr.mxu0 %v2138_v0  ;;  %1810 = vmatmul.mubr.msk.f32.gmra.mxu1 %vm197_vm1, %v34_v33  ;;  %v63_v33 = vld [vmem:[%s4141_s0 + $0x188] sm:$0xff] }
  0x24   :  { %380 = vmatpush2.msra.mxu0 %v191_v28  ;;  %1812 = vmatprep.mubr.msk.f32.mxu1 %vm2139_vm0, %v2138_v0  ;;  %v91_v28 = vld [vmem:[%s4141_s0 + $0x268] sm:$0xff] }
  0x25   :  { %381 = vmatprep.subr.mxu0 %v2138_v0 }
  0x26   :  { %382 = vmatpush2.msra.mxu0 %v190_v29  ;;  %v56_v29 = vld [vmem:[%s4141_s0 + $0x150] sm:$0xff] }
  0x27   :  { %383 = vmatprep.subr.mxu0 %v2138_v0  ;;  %1813 = vmatmul.mubr.msk.f32.gmra.mxu1 %vm197_vm1, %v37_v36  ;;  %v66_v36 = vld [vmem:[%s4141_s0 + $0x1a0] sm:$0xff] }
  0x28   :  { %384 = vmatpush2.msra.mxu0 %v189_v31  ;;  %1815 = vmatprep.mubr.msk.f32.mxu1 %vm2139_vm0, %v2138_v0  ;;  %v94_v31 = vld [vmem:[%s4141_s0 + $0x280] sm:$0xff] }
  0x29   :  { %385 = vmatprep.subr.mxu0 %v2138_v0 }
  0x2a   :  { %386 = vmatpush2.msra.mxu0 %v188_v32  ;;  %v59_v32 = vld [vmem:[%s4141_s0 + $0x168] sm:$0xff] }
  0x2b   :  { %387 = vmatprep.subr.mxu0 %v2138_v0  ;;  %1816 = vmatmul.mubr.msk.f32.gmra.mxu1 %vm197_vm1, %v40_v39  ;;  %v69_v39 = vld [vmem:[%s4141_s0 + $0x1b8] sm:$0xff] }
  0x2c   :  { %388 = vmatpush2.msra.mxu0 %v187_v34  ;;  %1818 = vmatprep.mubr.msk.f32.mxu1 %vm2139_vm0, %v2138_v0  ;;  %v97_v34 = vld [vmem:[%s4141_s0 + $0x298] sm:$0xff] }
  0x2d   :  { %389 = vmatprep.subr.mxu0 %v2138_v0 }
  0x2e   :  { %390 = vmatpush2.msra.mxu0 %v186_v35  ;;  %v62_v35 = vld [vmem:[%s4141_s0 + $0x180] sm:$0xff] }
  0x2f   :  { %391 = vmatprep.subr.mxu0 %v2138_v0  ;;  %1819 = vmatmul.mubr.msk.f32.gmra.mxu1 %vm197_vm1, %v43_v42  ;;  %v72_v42 = vld [vmem:[%s4141_s0 + $0x1d0] sm:$0xff] }
  0x30   :  { %392 = vmatpush2.msra.mxu0 %v185_v37  ;;  %1821 = vmatprep.mubr.msk.f32.mxu1 %vm2139_vm0, %v2138_v0  ;;  %v100_v37 = vld [vmem:[%s4141_s0 + $0x2b0] sm:$0xff] }
  0x31   :  { %393 = vmatprep.subr.mxu0 %v2138_v0 }
  0x32   :  { %394 = vmatpush2.msra.mxu0 %v184_v38  ;;  %v65_v38 = vld [vmem:[%s4141_s0 + $0x198] sm:$0xff] }
  0x33   :  { %395 = vmatprep.subr.mxu0 %v2138_v0  ;;  %1822 = vmatmul.mubr.msk.f32.gmra.mxu1 %vm197_vm1, %v46_v45  ;;  %v75_v45 = vld [vmem:[%s4141_s0 + $0x1e8] sm:$0xff] }
  0x34   :  { %396 = vmatpush2.msra.mxu0 %v183_v40  ;;  %1824 = vmatprep.mubr.msk.f32.mxu1 %vm2139_vm0, %v2138_v0  ;;  %v103_v40 = vld [vmem:[%s4141_s0 + $0x2c8] sm:$0xff] }
  0x35   :  { %397 = vmatprep.subr.mxu0 %v2138_v0 }
  0x36   :  { %398 = vmatpush2.msra.mxu0 %v182_v41  ;;  %v68_v41 = vld [vmem:[%s4141_s0 + $0x1b0] sm:$0xff] }
  0x37   :  { %399 = vmatprep.subr.mxu0 %v2138_v0  ;;  %1825 = vmatmul.mubr.msk.f32.gmra.mxu1 %vm197_vm1, %v49_v48  ;;  %v78_v48 = vld [vmem:[%s4141_s0 + $0x200] sm:$0xff] }
  0x38   :  { %400 = vmatpush2.msra.mxu0 %v181_v43  ;;  %1827 = vmatprep.mubr.msk.f32.mxu1 %vm2139_vm0, %v2138_v0  ;;  %v106_v43 = vld [vmem:[%s4141_s0 + $0x2e0] sm:$0xff] }
  0x39   :  { %401 = vmatprep.subr.mxu0 %v2138_v0 }
  0x3a   :  { %402 = vmatpush2.msra.mxu0 %v180_v44  ;;  %v71_v44 = vld [vmem:[%s4141_s0 + $0x1c8] sm:$0xff] }
  0x3b   :  { %403 = vmatprep.subr.mxu0 %v2138_v0  ;;  %1828 = vmatmul.mubr.msk.f32.gmra.mxu1 %vm197_vm1, %v52_v52  ;;  %v115_v52 = vld [vmem:[%s4141_s0 + $0x328] sm:$0xff] }
  0x3c   :  { %404 = vmatpush2.msra.mxu0 %v179_v46  ;;  %1830 = vmatprep.mubr.msk.f32.mxu1 %vm2139_vm0, %v2138_v0  ;;  %v109_v46 = vld [vmem:[%s4141_s0 + $0x2f8] sm:$0xff] }
  0x3d   :  { %405 = vmatprep.subr.mxu0 %v2138_v0 }
  0x3e   :  { %406 = vmatpush2.msra.mxu0 %v178_v47  ;;  %v74_v47 = vld [vmem:[%s4141_s0 + $0x1e0] sm:$0xff] }
  0x3f   :  { %407 = vmatprep.subr.mxu0 %v2138_v0  ;;  %1831 = vmatmul.mubr.msk.f32.gmra.mxu1 %vm197_vm1, %v55_v55  ;;  %v118_v55 = vld [vmem:[%s4141_s0 + $0x340] sm:$0xff] }
  0x40   :  { %408 = vmatpush2.msra.mxu0 %v177_v49  ;;  %1833 = vmatprep.mubr.msk.f32.mxu1 %vm2139_vm0, %v2138_v0  ;;  %v112_v49 = vld [vmem:[%s4141_s0 + $0x310] sm:$0xff] }
  0x41   :  { %410 = vmatmul.mubr.f32.vlgmr.msra.gmra.mxu0 %v14_v50  ;;  %v77_v50 = vld [vmem:[%s4141_s0 + $0x1f8] sm:$0xff] }
  0x42   :  { %414 = vmatprep.mubr.f32.mxu0 %v18_v51  ;;  %v81_v51 = vld [vmem:[%s4141_s0 + $0x218] sm:$0xff] }
  0x43   :  { %1834 = vmatmul.mubr.msk.f32.gmra.mxu1 %vm197_vm1, %v58_v58  ;;  %v121_v58 = vld [vmem:[%s4141_s0 + $0x358] sm:$0xff] }
  0x44   :  { %1836 = vmatprep.mubr.msk.f32.mxu1 %vm2139_vm0, %v2138_v0 }
  0x45   :  { %415 = vmatmul.mubr.f32.gmra.mxu0 %v17_v53  ;;  %v80_v53 = vld [vmem:[%s4141_s0 + $0x210] sm:$0xff] }
  0x46   :  { %419 = vmatprep.mubr.f32.mxu0 %v21_v54  ;;  %v84_v54 = vld [vmem:[%s4141_s0 + $0x230] sm:$0xff] }
  0x47   :  { %1837 = vmatmul.mubr.msk.f32.gmra.mxu1 %vm197_vm1, %v61_v61  ;;  %v124_v61 = vld [vmem:[%s4141_s0 + $0x370] sm:$0xff] }
  0x48   :  { %1839 = vmatprep.mubr.msk.f32.mxu1 %vm2139_vm0, %v2138_v0 }
  0x49   :  { %420 = vmatmul.mubr.f32.gmra.mxu0 %v20_v56  ;;  %v83_v56 = vld [vmem:[%s4141_s0 + $0x228] sm:$0xff] }
  0x4a   :  { %424 = vmatprep.mubr.f32.mxu0 %v24_v57  ;;  %v87_v57 = vld [vmem:[%s4141_s0 + $0x248] sm:$0xff] }
  0x4b   :  { %1840 = vmatmul.mubr.msk.f32.gmra.mxu1 %vm197_vm1, %v64_v1  ;;  %v127_v1 = vld [vmem:[%s4141_s0 + $0x388] sm:$0xff] }
  0x4c   :  { %1842 = vmatprep.mubr.msk.f32.mxu1 %vm2139_vm0, %v2138_v0 }
  0x4d   :  { %425 = vmatmul.mubr.f32.gmra.mxu0 %v23_v59  ;;  %v86_v59 = vld [vmem:[%s4141_s0 + $0x240] sm:$0xff] }
  0x4e   :  { %429 = vmatprep.mubr.f32.mxu0 %v27_v60  ;;  %v90_v60 = vld [vmem:[%s4141_s0 + $0x260] sm:$0xff] }
  0x4f   :  { %1843 = vmatmul.mubr.msk.f32.gmra.mxu1 %vm197_vm1, %v67_v4  ;;  %v130_v4 = vld [vmem:[%s4141_s0 + $0x3a0] sm:$0xff] }
  0x50   :  { %1845 = vmatprep.mubr.msk.f32.mxu1 %vm2139_vm0, %v2138_v0 }
  0x51   :  { %430 = vmatmul.mubr.f32.gmra.mxu0 %v26_v62  ;;  %v89_v62 = vld [vmem:[%s4141_s0 + $0x258] sm:$0xff] }
  0x52   :  { %434 = vmatprep.mubr.f32.mxu0 %v30_v63  ;;  %v93_v63 = vld [vmem:[%s4141_s0 + $0x278] sm:$0xff] }
  0x53   :  { %1846 = vmatmul.mubr.msk.f32.gmra.mxu1 %vm197_vm1, %v70_v7  ;;  %v133_v7 = vld [vmem:[%s4141_s0 + $0x3b8] sm:$0xff] }
  0x54   :  { %1848 = vmatprep.mubr.msk.f32.mxu1 %vm2139_vm0, %v2138_v0 }
  0x55   :  { %435 = vmatmul.mubr.f32.gmra.mxu0 %v29_v2  ;;  %v92_v2 = vld [vmem:[%s4141_s0 + $0x270] sm:$0xff] }
  0x56   :  { %439 = vmatprep.mubr.f32.mxu0 %v33_v3  ;;  %v96_v3 = vld [vmem:[%s4141_s0 + $0x290] sm:$0xff] }
  0x57   :  { %1849 = vmatmul.mubr.msk.f32.gmra.mxu1 %vm197_vm1, %v73_v10  ;;  %v136_v10 = vld [vmem:[%s4141_s0 + $0x3d0] sm:$0xff] }
  0x58   :  { %1851 = vmatprep.mubr.msk.f32.mxu1 %vm2139_vm0, %v2138_v0 }
  0x59   :  { %440 = vmatmul.mubr.f32.gmra.mxu0 %v32_v5  ;;  %v95_v5 = vld [vmem:[%s4141_s0 + $0x288] sm:$0xff] }
  0x5a   :  { %444 = vmatprep.mubr.f32.mxu0 %v36_v6  ;;  %v99_v6 = vld [vmem:[%s4141_s0 + $0x2a8] sm:$0xff] }
  0x5b   :  { %1852 = vmatmul.mubr.msk.f32.gmra.mxu1 %vm197_vm1, %v76_v13  ;;  %v139_v13 = vld [vmem:[%s4141_s0 + $0x3e8] sm:$0xff] }
  0x5c   :  { %1854 = vmatprep.mubr.msk.f32.mxu1 %vm2139_vm0, %v2138_v0 }
  0x5d   :  { %445 = vmatmul.mubr.f32.gmra.mxu0 %v35_v8  ;;  %v98_v8 = vld [vmem:[%s4141_s0 + $0x2a0] sm:$0xff] }
  0x5e   :  { %449 = vmatprep.mubr.f32.mxu0 %v39_v9  ;;  %v102_v9 = vld [vmem:[%s4141_s0 + $0x2c0] sm:$0xff] }
  0x5f   :  { %1855 = vmatmul.mubr.msk.f32.gmra.mxu1 %vm197_vm1, %v79_v16  ;;  %v142_v16 = vld [vmem:[%s4141_s0 + $0x400] sm:$0xff] }
  0x60   :  { %1857 = vmatprep.mubr.msk.f32.mxu1 %vm2139_vm0, %v2138_v0 }
  0x61   :  { %450 = vmatmul.mubr.f32.gmra.mxu0 %v38_v11  ;;  %v101_v11 = vld [vmem:[%s4141_s0 + $0x2b8] sm:$0xff] }
  0x62   :  { %454 = vmatprep.mubr.f32.mxu0 %v42_v12  ;;  %v105_v12 = vld [vmem:[%s4141_s0 + $0x2d8] sm:$0xff] }
  0x63   :  { %1858 = vmatmul.mubr.msk.f32.gmra.mxu1 %vm197_vm1, %v82_v19  ;;  %v145_v19 = vld [vmem:[%s4141_s0 + $0x418] sm:$0xff] }
  0x64   :  { %1860 = vmatprep.mubr.msk.f32.mxu1 %vm2139_vm0, %v2138_v0 }
  0x65   :  { %455 = vmatmul.mubr.f32.gmra.mxu0 %v41_v14  ;;  %v104_v14 = vld [vmem:[%s4141_s0 + $0x2d0] sm:$0xff] }
  0x66   :  { %459 = vmatprep.mubr.f32.mxu0 %v45_v15  ;;  %v108_v15 = vld [vmem:[%s4141_s0 + $0x2f0] sm:$0xff] }
  0x67   :  { %1861 = vmatmul.mubr.msk.f32.gmra.mxu1 %vm197_vm1, %v85_v22  ;;  %v148_v22 = vld [vmem:[%s4141_s0 + $0x430] sm:$0xff] }
  0x68   :  { %1863 = vmatprep.mubr.msk.f32.mxu1 %vm2139_vm0, %v2138_v0 }
  0x69   :  { %460 = vmatmul.mubr.f32.gmra.mxu0 %v44_v17  ;;  %v107_v17 = vld [vmem:[%s4141_s0 + $0x2e8] sm:$0xff] }
  0x6a   :  { %464 = vmatprep.mubr.f32.mxu0 %v48_v18  ;;  %v111_v18 = vld [vmem:[%s4141_s0 + $0x308] sm:$0xff] }
  0x6b   :  { %1864 = vmatmul.mubr.msk.f32.gmra.mxu1 %vm197_vm1, %v88_v25  ;;  %v151_v25 = vld [vmem:[%s4141_s0 + $0x448] sm:$0xff] }
  0x6c   :  { %1866 = vmatprep.mubr.msk.f32.mxu1 %vm2139_vm0, %v2138_v0 }
  0x6d   :  { %465 = vmatmul.mubr.f32.gmra.mxu0 %v47_v20  ;;  %v110_v20 = vld [vmem:[%s4141_s0 + $0x300] sm:$0xff] }
  0x6e   :  { %469 = vmatprep.mubr.f32.mxu0 %v51_v21  ;;  %v114_v21 = vld [vmem:[%s4141_s0 + $0x320] sm:$0xff] }
  0x6f   :  { %1867 = vmatmul.mubr.msk.f32.gmra.mxu1 %vm197_vm1, %v91_v28  ;;  %v154_v28 = vld [vmem:[%s4141_s0 + $0x460] sm:$0xff] }
  0x70   :  { %1869 = vmatprep.mubr.msk.f32.mxu1 %vm2139_vm0, %v2138_v0 }
  0x71   :  { %470 = vmatmul.mubr.f32.gmra.mxu0 %v50_v23  ;;  %v113_v23 = vld [vmem:[%s4141_s0 + $0x318] sm:$0xff] }
  0x72   :  { %474 = vmatprep.mubr.f32.mxu0 %v54_v24  ;;  %v117_v24 = vld [vmem:[%s4141_s0 + $0x338] sm:$0xff] }
  0x73   :  { %1870 = vmatmul.mubr.msk.f32.gmra.mxu1 %vm197_vm1, %v94_v31  ;;  %v157_v31 = vld [vmem:[%s4141_s0 + $0x478] sm:$0xff] }
  0x74   :  { %1872 = vmatprep.mubr.msk.f32.mxu1 %vm2139_vm0, %v2138_v0 }
  0x75   :  { %475 = vmatmul.mubr.f32.gmra.mxu0 %v53_v26  ;;  %v116_v26 = vld [vmem:[%s4141_s0 + $0x330] sm:$0xff] }
  0x76   :  { %479 = vmatprep.mubr.f32.mxu0 %v57_v27  ;;  %v120_v27 = vld [vmem:[%s4141_s0 + $0x350] sm:$0xff] }
  0x77   :  { %1873 = vmatmul.mubr.msk.f32.gmra.mxu1 %vm197_vm1, %v97_v34  ;;  %v160_v34 = vld [vmem:[%s4141_s0 + $0x490] sm:$0xff] }
  0x78   :  { %1875 = vmatprep.mubr.msk.f32.mxu1 %vm2139_vm0, %v2138_v0 }
  0x79   :  { %480 = vmatmul.mubr.f32.gmra.mxu0 %v56_v29  ;;  %v119_v29 = vld [vmem:[%s4141_s0 + $0x348] sm:$0xff] }
  0x7a   :  { %484 = vmatprep.mubr.f32.mxu0 %v60_v30  ;;  %v123_v30 = vld [vmem:[%s4141_s0 + $0x368] sm:$0xff] }
  0x7b   :  { %1876 = vmatmul.mubr.msk.f32.gmra.mxu1 %vm197_vm1, %v100_v37  ;;  %v129_v37 = vld [vmem:[%s4141_s0 + $0x398] sm:$0xff] }
  0x7c   :  { %1878 = vmatprep.mubr.msk.f32.mxu1 %vm2139_vm0, %v2138_v0 }
  0x7d   :  { %485 = vmatmul.mubr.f32.gmra.mxu0 %v59_v32  ;;  %v122_v32 = vld [vmem:[%s4141_s0 + $0x360] sm:$0xff] }
  0x7e   :  { %489 = vmatprep.mubr.f32.mxu0 %v63_v33  ;;  %v126_v33 = vld [vmem:[%s4141_s0 + $0x380] sm:$0xff] }
  0x7f   :  { %1879 = vmatmul.mubr.msk.f32.gmra.mxu1 %vm197_vm1, %v103_v40  ;;  %v132_v40 = vld [vmem:[%s4141_s0 + $0x3b0] sm:$0xff] }
  0x80   :  { %1881 = vmatprep.mubr.msk.f32.mxu1 %vm2139_vm0, %v2138_v0 }
  0x81   :  { %490 = vmatmul.mubr.f32.gmra.mxu0 %v62_v35  ;;  %v125_v35 = vld [vmem:[%s4141_s0 + $0x378] sm:$0xff] }
  0x82   :  { %494 = vmatprep.mubr.f32.mxu0 %v66_v36 }
  0x83   :  { %1882 = vmatmul.mubr.msk.f32.gmra.mxu1 %vm197_vm1, %v106_v43 }
  0x84   :  { %1884 = vmatprep.mubr.msk.f32.mxu1 %vm2139_vm0, %v2138_v0 }
  0x85   :  { %495 = vmatmul.mubr.f32.gmra.mxu0 %v65_v38 }
  0x86   :  { %499 = vmatprep.mubr.f32.mxu0 %v69_v39 }
  0x87   :  { %1885 = vmatmul.mubr.msk.f32.gmra.mxu1 %vm197_vm1, %v109_v46  ;;  %v134_v46 = vld [vmem:[%s4141_s0 + $0x3c0] sm:$0xff] }
  0x88   :  { %1887 = vmatprep.mubr.msk.f32.mxu1 %vm2139_vm0, %v2138_v0 }
  0x89   :  { %500 = vmatmul.mubr.f32.gmra.mxu0 %v68_v41 }
  0x8a   :  { %504 = vmatprep.mubr.f32.mxu0 %v72_v42  ;;  %v131_v42 = vld [vmem:[%s4141_s0 + $0x3a8] sm:$0xff] }
  0x8b   :  { %1888 = vmatmul.mubr.msk.f32.gmra.mxu1 %vm197_vm1, %v112_v49 }
  0x8c   :  { %1890 = vmatprep.mubr.msk.f32.mxu1 %vm2139_vm0, %v2138_v0 }
  0x8d   :  { %505 = vmatmul.mubr.f32.gmra.mxu0 %v71_v44  ;;  %v135_v44 = vld [vmem:[%s4141_s0 + $0x3c8] sm:$0xff] }
  0x8e   :  { %509 = vmatprep.mubr.f32.mxu0 %v75_v45 }
  0x8f   :  { %1891 = vmatmul.mubr.msk.f32.gmra.mxu1 %vm197_vm1, %v115_v52  ;;  %v141_v52 = vld [vmem:[%s4141_s0 + $0x3f8] sm:$0xff] }
  0x90   :  { %1893 = vmatprep.mubr.msk.f32.mxu1 %vm2139_vm0, %v2138_v0 }
  0x91   :  { %510 = vmatmul.mubr.f32.gmra.mxu0 %v74_v47 }
  0x92   :  { %514 = vmatprep.mubr.f32.mxu0 %v78_v48  ;;  %v138_v48 = vld [vmem:[%s4141_s0 + $0x3e0] sm:$0xff] }
  0x93   :  { %1894 = vmatmul.mubr.msk.f32.gmra.mxu1 %vm197_vm1, %v118_v55 }
  0x94   :  { %1896 = vmatprep.mubr.msk.f32.mxu1 %vm2139_vm0, %v2138_v0 }
  0x95   :  { %515 = vmatmul.mubr.f32.gmra.mxu0 %v77_v50  ;;  %v137_v50 = vld [vmem:[%s4141_s0 + $0x3d8] sm:$0xff] }
  0x96   :  { %519 = vmatprep.mubr.f32.mxu0 %v81_v51 }
  0x97   :  { %1897 = vmatmul.mubr.msk.f32.gmra.mxu1 %vm197_vm1, %v121_v58  ;;  %v143_v58 = vld [vmem:[%s4141_s0 + $0x408] sm:$0xff] }
  0x98   :  { %1899 = vmatprep.mubr.msk.f32.mxu1 %vm2139_vm0, %v2138_v0 }
  0x99   :  { %520 = vmatmul.mubr.f32.gmra.mxu0 %v80_v53 }
  0x9a   :  { %524 = vmatprep.mubr.f32.mxu0 %v84_v54  ;;  %v140_v54 = vld [vmem:[%s4141_s0 + $0x3f0] sm:$0xff] }
  0x9b   :  { %1900 = vmatmul.mubr.msk.f32.gmra.mxu1 %vm197_vm1, %v124_v61 }
  0x9c   :  { %1902 = vmatprep.mubr.msk.f32.mxu1 %vm2139_vm0, %v2138_v0 }
  0x9d   :  { %525 = vmatmul.mubr.f32.gmra.mxu0 %v83_v56  ;;  %v144_v56 = vld [vmem:[%s4141_s0 + $0x410] sm:$0xff] }
  0x9e   :  { %529 = vmatprep.mubr.f32.mxu0 %v87_v57 }
  0x9f   :  { %1903 = vmatmul.mubr.msk.f32.gmra.mxu1 %vm197_vm1, %v127_v1  ;;  %v150_v1 = vld [vmem:[%s4141_s0 + $0x440] sm:$0xff] }
  0xa0   :  { %1905 = vmatprep.mubr.msk.f32.mxu1 %vm2139_vm0, %v2138_v0 }
  0xa1   :  { %530 = vmatmul.mubr.f32.gmra.mxu0 %v86_v59 }
  0xa2   :  { %534 = vmatprep.mubr.f32.mxu0 %v90_v60  ;;  %v147_v60 = vld [vmem:[%s4141_s0 + $0x428] sm:$0xff] }
  0xa3   :  { %1906 = vmatmul.mubr.msk.f32.gmra.mxu1 %vm197_vm1, %v130_v4 }
  0xa4   :  { %1908 = vmatprep.mubr.msk.f32.mxu1 %vm2139_vm0, %v2138_v0 }
  0xa5   :  { %535 = vmatmul.mubr.f32.gmra.mxu0 %v89_v62  ;;  %v146_v62 = vld [vmem:[%s4141_s0 + $0x420] sm:$0xff] }
  0xa6   :  { %539 = vmatprep.mubr.f32.mxu0 %v93_v63 }
  0xa7   :  { %1909 = vmatmul.mubr.msk.f32.gmra.mxu1 %vm197_vm1, %v133_v7  ;;  %v152_v7 = vld [vmem:[%s4141_s0 + $0x450] sm:$0xff] }
  0xa8   :  { %1911 = vmatprep.mubr.msk.f32.mxu1 %vm2139_vm0, %v2138_v0 }
  0xa9   :  { %540 = vmatmul.mubr.f32.gmra.mxu0 %v92_v2 }
  0xaa   :  { %544 = vmatprep.mubr.f32.mxu0 %v96_v3  ;;  %v149_v3 = vld [vmem:[%s4141_s0 + $0x438] sm:$0xff] }
  0xab   :  { %1912 = vmatmul.mubr.msk.f32.gmra.mxu1 %vm197_vm1, %v136_v10 }
  0xac   :  { %1914 = vmatprep.mubr.msk.f32.mxu1 %vm2139_vm0, %v2138_v0 }
  0xad   :  { %545 = vmatmul.mubr.f32.gmra.mxu0 %v95_v5  ;;  %v153_v5 = vld [vmem:[%s4141_s0 + $0x458] sm:$0xff] }
  0xae   :  { %549 = vmatprep.mubr.f32.mxu0 %v99_v6 }
  0xaf   :  { %1915 = vmatmul.mubr.msk.f32.gmra.mxu1 %vm197_vm1, %v139_v13  ;;  %v159_v13 = vld [vmem:[%s4141_s0 + $0x488] sm:$0xff] }
  0xb0   :  { %1917 = vmatprep.mubr.msk.f32.mxu1 %vm2139_vm0, %v2138_v0 }
  0xb1   :  { %550 = vmatmul.mubr.f32.gmra.mxu0 %v98_v8 }
  0xb2   :  { %554 = vmatprep.mubr.f32.mxu0 %v102_v9  ;;  %v156_v9 = vld [vmem:[%s4141_s0 + $0x470] sm:$0xff] }
  0xb3   :  { %1918 = vmatmul.mubr.msk.f32.gmra.mxu1 %vm197_vm1, %v142_v16 }
  0xb4   :  { %1920 = vmatprep.mubr.msk.f32.mxu1 %vm2139_vm0, %v2138_v0 }
  0xb5   :  { %555 = vmatmul.mubr.f32.gmra.mxu0 %v101_v11  ;;  %v155_v11 = vld [vmem:[%s4141_s0 + $0x468] sm:$0xff] }
  0xb6   :  { %559 = vmatprep.mubr.f32.mxu0 %v105_v12 }
  0xb7   :  { %1921 = vmatmul.mubr.msk.f32.gmra.mxu1 %vm197_vm1, %v145_v19 }
  0xb8   :  { %1923 = vmatprep.mubr.msk.f32.mxu1 %vm2139_vm0, %v2138_v0 }
  0xb9   :  { %560 = vmatmul.mubr.f32.gmra.mxu0 %v104_v14 }
  0xba   :  { %564 = vmatprep.mubr.f32.mxu0 %v108_v15  ;;  %v158_v15 = vld [vmem:[%s4141_s0 + $0x480] sm:$0xff] }
  0xbb   :  { %1924 = vmatmul.mubr.msk.f32.gmra.mxu1 %vm197_vm1, %v148_v22 }
  0xbc   :  { %1926 = vmatprep.mubr.msk.f32.mxu1 %vm2139_vm0, %v2138_v0 }
  0xbd   :  { %565 = vmatmul.mubr.f32.gmra.mxu0 %v107_v17 }
  0xbe   :  { %569 = vmatprep.mubr.f32.mxu0 %v111_v18 }
  0xbf   :  { %1927 = vmatmul.mubr.msk.f32.gmra.mxu1 %vm197_vm1, %v151_v25 }
  0xc0   :  { %1929 = vmatprep.mubr.msk.f32.mxu1 %vm2139_vm0, %v2138_v0 }
  0xc1   :  { %570 = vmatmul.mubr.f32.gmra.mxu0 %v110_v20 }
  0xc2   :  { %574 = vmatprep.mubr.f32.mxu0 %v114_v21 }
  0xc3   :  { %1930 = vmatmul.mubr.msk.f32.gmra.mxu1 %vm197_vm1, %v154_v28 }
  0xc4   :  { %1932 = vmatprep.mubr.msk.f32.mxu1 %vm2139_vm0, %v2138_v0 }
  0xc5   :  { %575 = vmatmul.mubr.f32.gmra.mxu0 %v113_v23 }
  0xc6   :  { %579 = vmatprep.mubr.f32.mxu0 %v117_v24 }
  0xc7   :  { %1933 = vmatmul.mubr.msk.f32.gmra.mxu1 %vm197_vm1, %v157_v31 }
  0xc8   :  { %1935 = vmatprep.mubr.msk.f32.mxu1 %vm2139_vm0, %v2138_v0  ;;  %v128_v0 = vld [vmem:[%s4141_s0 + $0x390] sm:$0xff] }
  0xc9   :  { %580 = vmatmul.mubr.f32.gmra.mxu0 %v116_v26 }
  0xca   :  { %584 = vmatprep.mubr.f32.mxu0 %v120_v27 }
  0xcb   :  { %v2825_v36 = vpop.f32.mrf.mxu1  ;;  %1936 = vmatmul.mubr.msk.f32.gmra.mxu1 %vm197_vm1, %v160_v34 }
  0xcd   :  { %585 = vmatmul.mubr.f32.gmra.mxu0 %v119_v29  ;;  %v1793_v38 = vpop.f32.mrf.mxu1 }
  0xce   :  { %589 = vmatprep.mubr.f32.mxu0 %v123_v30 }
  0xcf   :  { %v2834_v39 = vpop.f32.mrf.mxu1 }
  0xd1   :  { %590 = vmatmul.mubr.f32.gmra.mxu0 %v122_v32  ;;  %v1796_v41 = vpop.f32.mrf.mxu1 }
  0xd2   :  { %594 = vmatprep.mubr.f32.mxu0 %v126_v33 }
  0xd3   :  { %v2842_v43 = vpop.f32.mrf.mxu1 }
  0xd5   :  { %595 = vmatmul.mubr.f32.gmra.mxu0 %v125_v35  ;;  %v1799_v45 = vpop.f32.mrf.mxu1 }
  0xd6   :  { %599 = vmatprep.mubr.f32.mxu0 %v129_v37 }
  0xd7   :  { %v2850_v47 = vpop.f32.mrf.mxu1 }
  0xd9   :  { %600 = vmatmul.mubr.f32.gmra.mxu0 %v128_v0  ;;  %v1802_v49 = vpop.f32.mrf.mxu1 }
  0xda   :  { %604 = vmatprep.mubr.f32.mxu0 %v132_v40 }
  0xdb   :  { %v2858_v51 = vpop.f32.mrf.mxu1 }
  0xdd   :  { %605 = vmatmul.mubr.f32.gmra.mxu0 %v131_v42  ;;  %v1805_v53 = vpop.f32.mrf.mxu1 }
  0xde   :  { %609 = vmatprep.mubr.f32.mxu0 %v135_v44 }
  0xdf   :  { %v2866_v55 = vpop.f32.mrf.mxu1 }
  0xe1   :  { %610 = vmatmul.mubr.f32.gmra.mxu0 %v134_v46  ;;  %v1808_v57 = vpop.f32.mrf.mxu1 }
  0xe2   :  { %614 = vmatprep.mubr.f32.mxu0 %v138_v48 }
  0xe3   :  { %v2874_v59 = vpop.f32.mrf.mxu1 }
  0xe5   :  { %615 = vmatmul.mubr.f32.gmra.mxu0 %v137_v50  ;;  %v1811_v61 = vpop.f32.mrf.mxu1 }
  0xe6   :  { %619 = vmatprep.mubr.f32.mxu0 %v141_v52 }
  0xe7   :  { %v2882_v63 = vpop.f32.mrf.mxu1 }
  0xe9   :  { %620 = vmatmul.mubr.f32.gmra.mxu0 %v140_v54  ;;  %v1814_v2 = vpop.f32.mrf.mxu1 }
  0xea   :  { %624 = vmatprep.mubr.f32.mxu0 %v144_v56 }
  0xeb   :  { %v761_v4 = vpop.f32.mrf.mxu1 }
  0xed   :  { %625 = vmatmul.mubr.f32.gmra.mxu0 %v143_v58  ;;  %v1817_v6 = vpop.f32.mrf.mxu1 }
  0xee   :  { %629 = vmatprep.mubr.f32.mxu0 %v147_v60 }
  0xef   :  { %v766_v8 = vpop.f32.mrf.mxu1 }
  0xf1   :  { %630 = vmatmul.mubr.f32.gmra.mxu0 %v146_v62  ;;  %v1820_v10 = vpop.f32.mrf.mxu1 }
  0xf2   :  { %634 = vmatprep.mubr.f32.mxu0 %v150_v1 }
  0xf3   :  { %v771_v12 = vpop.f32.mrf.mxu1 }
  0xf5   :  { %635 = vmatmul.mubr.f32.gmra.mxu0 %v149_v3  ;;  %v1823_v14 = vpop.f32.mrf.mxu1 }
  0xf6   :  { %639 = vmatprep.mubr.f32.mxu0 %v153_v5 }
  0xf7   :  { %v776_v16 = vpop.f32.mrf.mxu1 }
  0xf9   :  { %640 = vmatmul.mubr.f32.gmra.mxu0 %v152_v7  ;;  %v1826_v17 = vpop.f32.mrf.mxu1 }
  0xfa   :  { %644 = vmatprep.mubr.f32.mxu0 %v156_v9 }
  0xfb   :  { %v781_v20 = vpop.f32.mrf.mxu1 }
  0xfd   :  { %645 = vmatmul.mubr.f32.gmra.mxu0 %v155_v11  ;;  %v1829_v22 = vpop.f32.mrf.mxu1 }
  0xfe   :  { %649 = vmatprep.mubr.f32.mxu0 %v159_v13 }
  0xff   :  { %v786_v25 = vpop.f32.mrf.mxu1 }
 0x101   :  { %v411_v18 = vpop.f32.mrf.mxu0  ;;  %650 = vmatmul.mubr.f32.gmra.mxu0 %v158_v15  ;;  %v1832_v27 = vpop.f32.mrf.mxu1 }
 0x102   :  { %v2909_v19 = vadd.f32 %v2825_v36, %v411_v18 }
 0x103   :  { %v413_v21 = vpop.f32.mrf.mxu0  ;;  %v791_v30 = vpop.f32.mrf.mxu1 }
 0x105   :  { %v416_v23 = vpop.f32.mrf.mxu0  ;;  %v1835_v32 = vpop.f32.mrf.mxu1 }
 0x106   :  { %v2912_v24 = vadd.f32 %v2834_v39, %v416_v23 }
 0x107   :  { %v418_v26 = vpop.f32.mrf.mxu0  ;;  %v796_v35 = vpop.f32.mrf.mxu1 }
 0x109   :  { %v421_v28 = vpop.f32.mrf.mxu0  ;;  %v1838_v37 = vpop.f32.mrf.mxu1 }
 0x10a   :  { %v2915_v29 = vadd.f32 %v2842_v43, %v421_v28 }
 0x10b   :  { %v423_v31 = vpop.f32.mrf.mxu0  ;;  %v801_v39 = vpop.f32.mrf.mxu1 }
 0x10d   :  { %v426_v33 = vpop.f32.mrf.mxu0  ;;  %v1841_v41 = vpop.f32.mrf.mxu1 }
 0x10e   :  { %v2918_v34 = vadd.f32 %v2850_v47, %v426_v33 }
 0x10f   :  { %v428_v36 = vpop.f32.mrf.mxu0  ;;  %v806_v44 = vpop.f32.mrf.mxu1 }
 0x111   :  { %v431_v38 = vpop.f32.mrf.mxu0  ;;  %v1844_v46 = vpop.f32.mrf.mxu1 }
 0x112   :  { %v2921_v0 = vadd.f32 %v2858_v51, %v431_v38 }
 0x113   :  { %v433_v40 = vpop.f32.mrf.mxu0  ;;  %v811_v49 = vpop.f32.mrf.mxu1 }
 0x115   :  { %v436_v42 = vpop.f32.mrf.mxu0  ;;  %v1847_v52 = vpop.f32.mrf.mxu1 }
 0x116   :  { %v2924_v43 = vadd.f32 %v2866_v55, %v436_v42 }
 0x117   :  { %v438_v45 = vpop.f32.mrf.mxu0  ;;  %v816_v54 = vpop.f32.mrf.mxu1 }
 0x119   :  { %v441_v48 = vpop.f32.mrf.mxu0  ;;  %v1850_v57 = vpop.f32.mrf.mxu1 }
 0x11a   :  { %v2927_v47 = vadd.f32 %v2874_v59, %v441_v48 }
 0x11b   :  { %v443_v50 = vpop.f32.mrf.mxu0  ;;  %v821_v60 = vpop.f32.mrf.mxu1 }
 0x11d   :  { %v446_v53 = vpop.f32.mrf.mxu0  ;;  %v1853_v62 = vpop.f32.mrf.mxu1 }
 0x11e   :  { %v2930_v51 = vadd.f32 %v2882_v63, %v446_v53 }
 0x11f   :  { %v448_v56 = vpop.f32.mrf.mxu0  ;;  %v826_v59 = vpop.f32.mrf.mxu1 }
 0x121   :  { %v451_v58 = vpop.f32.mrf.mxu0  ;;  %v1856_v5 = vpop.f32.mrf.mxu1 }
 0x122   :  { %v2932_v55 = vadd.f32 %v761_v4, %v451_v58 }
 0x123   :  { %v453_v61 = vpop.f32.mrf.mxu0  ;;  %v831_v63 = vpop.f32.mrf.mxu1 }
 0x125   :  { %v456_v1 = vpop.f32.mrf.mxu0  ;;  %v1859_v10 = vpop.f32.mrf.mxu1 }
 0x126   :  { %v2934_v2 = vadd.f32 %v766_v8, %v456_v1 }
 0x127   :  { %v458_v3 = vpop.f32.mrf.mxu0  ;;  %v2940_v4 = vpop.f32.mrf.mxu1 }
 0x129   :  { %v461_v6 = vpop.f32.mrf.mxu0  ;;  %v1862_v15 = vpop.f32.mrf.mxu1 }
 0x12a   :  { %v2936_v7 = vadd.f32 %v771_v12, %v461_v6  ;;  %v965_v15 = vadd.f32 %v2912_v24, %v2909_v19 }
 0x12b   :  { %v463_v9 = vpop.f32.mrf.mxu0  ;;  %v2944_v8 = vpop.f32.mrf.mxu1 }
 0x12d   :  { %v466_v11 = vpop.f32.mrf.mxu0  ;;  %v1865_v22 = vpop.f32.mrf.mxu1 }
 0x12e   :  { %v2938_v13 = vadd.f32 %v776_v16, %v466_v11  ;;  %v966_v22 = vadd.f32 %v965_v15, %v2915_v29 }
 0x12f   :  { %v468_v14 = vpop.f32.mrf.mxu0  ;;  %v2948_v26 = vpop.f32.mrf.mxu1 }
 0x131   :  { %v471_v17 = vpop.f32.mrf.mxu0  ;;  %v1868_v28 = vpop.f32.mrf.mxu1 }
 0x132   :  { %v2942_v18 = vadd.f32 %v781_v20, %v471_v17 }
 0x133   :  { %v473_v21 = vpop.f32.mrf.mxu0  ;;  %v2952_v32 = vpop.f32.mrf.mxu1 }
 0x135   :  { %v476_v23 = vpop.f32.mrf.mxu0  ;;  %v1871_v36 = vpop.f32.mrf.mxu1 }
 0x136   :  { %v2946_v12 = vadd.f32 %v786_v25, %v476_v23 }
 0x137   :  { %v478_v27 = vpop.f32.mrf.mxu0  ;;  %v2956_v38 = vpop.f32.mrf.mxu1 }
 0x139   :  { %v481_v16 = vpop.f32.mrf.mxu0  ;;  %v1874_v41 = vpop.f32.mrf.mxu1 }
 0x13a   :  { %v2950_v31 = vadd.f32 %v791_v30, %v481_v16 }
 0x13b   :  { %v483_v33 = vpop.f32.mrf.mxu0  ;;  %v2960_v45 = vpop.f32.mrf.mxu1 }
 0x13d   :  { %v486_v20 = vpop.f32.mrf.mxu0  ;;  %v1877_v48 = vpop.f32.mrf.mxu1 }
 0x13e   :  { %v2954_v37 = vadd.f32 %v796_v35, %v486_v20 }
 0x13f   :  { %v488_v40 = vpop.f32.mrf.mxu0  ;;  %v2964_v52 = vpop.f32.mrf.mxu1 }
 0x141   :  { %v491_v25 = vpop.f32.mrf.mxu0  ;;  %v1880_v56 = vpop.f32.mrf.mxu1 }
 0x142   :  { %v2958_v42 = vadd.f32 %v801_v39, %v491_v25 }
 0x143   :  { %v493_v46 = vpop.f32.mrf.mxu0  ;;  %v2968_v58 = vpop.f32.mrf.mxu1 }
 0x145   :  { %v496_v30 = vpop.f32.mrf.mxu0  ;;  %v1883_v62 = vpop.f32.mrf.mxu1 }
 0x146   :  { %v2962_v50 = vadd.f32 %v806_v44, %v496_v30 }
 0x147   :  { %v498_v53 = vpop.f32.mrf.mxu0  ;;  %v2972_v3 = vpop.f32.mrf.mxu1 }
 0x149   :  { %v501_v35 = vpop.f32.mrf.mxu0  ;;  %v1886_v6 = vpop.f32.mrf.mxu1 }
 0x14a   :  { %v2966_v57 = vadd.f32 %v811_v49, %v501_v35 }
 0x14b   :  { %v503_v61 = vpop.f32.mrf.mxu0  ;;  %v2976_v10 = vpop.f32.mrf.mxu1 }
 0x14d   :  { %v506_v39 = vpop.f32.mrf.mxu0  ;;  %v1889_v14 = vpop.f32.mrf.mxu1 }
 0x14e   :  { %v2970_v1 = vadd.f32 %v816_v54, %v506_v39 }
 0x14f   :  { %v508_v5 = vpop.f32.mrf.mxu0  ;;  %v2982_v21 = vpop.f32.mrf.mxu1 }
 0x151   :  { %v511_v44 = vpop.f32.mrf.mxu0  ;;  %v1892_v23 = vpop.f32.mrf.mxu1 }
 0x152   :  { %v2974_v9 = vadd.f32 %v821_v60, %v511_v44  ;;  %v967_v60 = vadd.f32 %v966_v22, %v2918_v34 }
 0x153   :  { %v513_v11 = vpop.f32.mrf.mxu0  ;;  %v2988_v16 = vpop.f32.mrf.mxu1 }
 0x154   :  { %v968_v36 = vadd.f32 %v967_v60, %v2921_v0 }
 0x155   :  { %v516_v49 = vpop.f32.mrf.mxu0  ;;  %v1895_v20 = vpop.f32.mrf.mxu1 }
 0x156   :  { %v2980_v17 = vadd.f32 %v826_v59, %v516_v49  ;;  %v969_v59 = vadd.f32 %v968_v36, %v2924_v43 }
 0x157   :  { %v518_v54 = vpop.f32.mrf.mxu0  ;;  %v2995_v25 = vpop.f32.mrf.mxu1 }
 0x158   :  { %v970_v48 = vadd.f32 %v969_v59, %v2927_v47 }
 0x159   :  { %v521_v27 = vpop.f32.mrf.mxu0  ;;  %v1898_v30 = vpop.f32.mrf.mxu1 }
 0x15a   :  { %v2986_v28 = vadd.f32 %v831_v63, %v521_v27  ;;  %v971_v53 = vadd.f32 %v970_v48, %v2930_v51 }
 0x15b   :  { %v523_v33 = vpop.f32.mrf.mxu0  ;;  %v3002_v35 = vpop.f32.mrf.mxu1 }
 0x15c   :  { %v972_v62 = vadd.f32 %v971_v53, %v2932_v55 }
 0x15d   :  { %v526_v40 = vpop.f32.mrf.mxu0  ;;  %v1901_v39 = vpop.f32.mrf.mxu1 }
 0x15e   :  { %v2993_v41 = vadd.f32 %v2940_v4, %v526_v40  ;;  %v973_v5 = vadd.f32 %v972_v62, %v2934_v2 }
 0x15f   :  { %v528_v46 = vpop.f32.mrf.mxu0  ;;  %v3009_v44 = vpop.f32.mrf.mxu1 }
 0x160   :  { %v974_v14 = vadd.f32 %v973_v5, %v2936_v7 }
 0x161   :  { %v531_v63 = vpop.f32.mrf.mxu0  ;;  %v1904_v49 = vpop.f32.mrf.mxu1 }
 0x162   :  { %v3000_v56 = vadd.f32 %v2944_v8, %v531_v63  ;;  %v975_v15 = vadd.f32 %v974_v14, %v2938_v13 }
 0x163   :  { %v533_v61 = vpop.f32.mrf.mxu0  ;;  %v3016_v22 = vpop.f32.mrf.mxu1 }
 0x164   :  { %v976_v27 = vadd.f32 %v975_v15, %v2942_v18 }
 0x165   :  { %v536_v4 = vpop.f32.mrf.mxu0  ;;  %v1907_v60 = vpop.f32.mrf.mxu1 }
 0x166   :  { %v3007_v6 = vadd.f32 %v2948_v26, %v536_v4  ;;  %v977_v33 = vadd.f32 %v976_v27, %v2946_v12 }
 0x167   :  { %v538_v11 = vpop.f32.mrf.mxu0  ;;  %v3023_v20 = vpop.f32.mrf.mxu1 }
 0x168   :  { %v978_v59 = vadd.f32 %v977_v33, %v2950_v31 }
 0x169   :  { %v541_v8 = vpop.f32.mrf.mxu0  ;;  %v1910_v46 = vpop.f32.mrf.mxu1 }
 0x16a   :  { %v3014_v54 = vadd.f32 %v2952_v32, %v541_v8  ;;  %v979_v48 = vadd.f32 %v978_v59, %v2954_v37 }
 0x16b   :  { %v543_v23 = vpop.f32.mrf.mxu0  ;;  %v3030_v63 = vpop.f32.mrf.mxu1 }
 0x16c   :  { %v980_v61 = vadd.f32 %v979_v48, %v2958_v42 }
 0x16d   :  { %v546_v26 = vpop.f32.mrf.mxu0  ;;  %v1913_v62 = vpop.f32.mrf.mxu1 }
 0x16e   :  { %v3021_v36 = vadd.f32 %v2956_v38, %v546_v26  ;;  %v981_v39 = vadd.f32 %v980_v61, %v2962_v50 }
 0x16f   :  { %v548_v40 = vpop.f32.mrf.mxu0  ;;  %v3037_v5 = vpop.f32.mrf.mxu1 }
 0x170   :  { %v982_v14 = vadd.f32 %v981_v39, %v2966_v57 }
 0x171   :  { %v551_v32 = vpop.f32.mrf.mxu0  ;;  %v1916_v49 = vpop.f32.mrf.mxu1 }
 0x172   :  { %v3028_v30 = vadd.f32 %v2960_v45, %v551_v32  ;;  %v983_v8 = vadd.f32 %v982_v14, %v2970_v1 }
 0x173   :  { %v553_v53 = vpop.f32.mrf.mxu0  ;;  %v3044_v23 = vpop.f32.mrf.mxu1 }
 0x174   :  { %v984_v60 = vadd.f32 %v983_v8, %v2974_v9 }
 0x175   :  { %v556_v38 = vpop.f32.mrf.mxu0  ;;  %v1919_v26 = vpop.f32.mrf.mxu1 }
 0x176   :  { %v3035_v4 = vadd.f32 %v2964_v52, %v556_v38  ;;  %v985_v33 = vadd.f32 %v984_v60, %v2980_v17 }
 0x177   :  { %v558_v11 = vpop.f32.mrf.mxu0  ;;  %v3051_v59 = vpop.f32.mrf.mxu1 }
 0x178   :  { %v986_v32 = vadd.f32 %v985_v33, %v2986_v28 }
 0x179   :  { %v561_v45 = vpop.f32.mrf.mxu0  ;;  %v1922_v48 = vpop.f32.mrf.mxu1 }
 0x17a   :  { %v3042_v15 = vadd.f32 %v2968_v58, %v561_v45  ;;  %v987_v53 = vadd.f32 %v986_v32, %v2993_v41 }
 0x17b   :  { %v563_v27 = vpop.f32.mrf.mxu0  ;;  %v3058_v62 = vpop.f32.mrf.mxu1 }
 0x17c   :  { %v988_v39 = vadd.f32 %v987_v53, %v3000_v56 }
 0x17d   :  { %v566_v52 = vpop.f32.mrf.mxu0  ;;  %v1925_v11 = vpop.f32.mrf.mxu1 }
 0x17e   :  { %v3049_v40 = vadd.f32 %v2972_v3, %v566_v52  ;;  %v989_v14 = vadd.f32 %v988_v39, %v3007_v6 }
 0x17f   :  { %v568_v46 = vpop.f32.mrf.mxu0  ;;  %v946_v45 = vpop.f32.mrf.mxu1 }
 0x180   :  { %v990_v27 = vadd.f32 %v989_v14, %v3014_v54 }
 0x181   :  { %v571_v58 = vpop.f32.mrf.mxu0  ;;  %v1928_v60 = vpop.f32.mrf.mxu1 }
 0x182   :  { %v3056_v61 = vadd.f32 %v2976_v10, %v571_v58  ;;  %v991_v10 = vadd.f32 %v990_v27, %v3021_v36 }
 0x183   :  { %v573_v38 = vpop.f32.mrf.mxu0  ;;  %v951_v33 = vpop.f32.mrf.mxu1 }
 0x184   :  { %4187 = vst [vmem:[#allocation2_spill] sm:$0xff] %v3056_v61  ;;  %v992_v32 = vadd.f32 %v991_v10, %v3028_v30 }
 0x185   :  { %v576_v3 = vpop.f32.mrf.mxu0  ;;  %v1931_v48 = vpop.f32.mrf.mxu1 }
 0x186   :  { %v3063_v49 = vadd.f32 %v2982_v21, %v576_v3  ;;  %v993_v21 = vadd.f32 %v992_v32, %v3035_v4 }
 0x187   :  { %v578_v8 = vpop.f32.mrf.mxu0  ;;  %v956_v38 = vpop.f32.mrf.mxu1 }
 0x188   :  { %4188 = vst [vmem:[#allocation3_spill] sm:$0xff] %v3063_v49  ;;  %v994_v11 = vadd.f32 %v993_v21, %v3042_v15 }
 0x189   :  { %v581_v26 = vpop.f32.mrf.mxu0  ;;  %v1934_v3 = vpop.f32.mrf.mxu1 }
 0x18a   :  { %v3068_v52 = vadd.f32 %v2988_v16, %v581_v26  ;;  %v995_v16 = vadd.f32 %v994_v11, %v3049_v40 }
 0x18b   :  { %v583_v46 = vpop.f32.mrf.mxu0  ;;  %v961_v27 = vpop.f32.mrf.mxu1 }
 0x18c   :  { %4189 = vst [vmem:[#allocation4_spill] sm:$0xff] %v3068_v52  ;;  %v996_v26 = vadd.f32 %v995_v16, %v3056_v61 }
 0x18d   :  { %v586_v58 = vpop.f32.mrf.mxu0  ;;  %v1937_v10 = vpop.f32.mrf.mxu1 }
 0x18e   :  { %v3073_v53 = vadd.f32 %v2995_v25, %v586_v58  ;;  %v997_v25 = vadd.f32 %v996_v26, %v3063_v49 }
 0x18f   :  { %v588_v39 = vpop.f32.mrf.mxu0 }
 0x190   :  { %4190 = vst [vmem:[#allocation5_spill] sm:$0xff] %v3073_v53  ;;  %v998_v58 = vadd.f32 %v997_v25, %v3068_v52 }
 0x191   :  { %v591_v14 = vpop.f32.mrf.mxu0 }
 0x192   :  { %v3078_v8 = vadd.f32 %v3002_v35, %v591_v14  ;;  %v999_v39 = vadd.f32 %v998_v58, %v3073_v53 }
 0x193   :  { %v593_v60 = vpop.f32.mrf.mxu0 }
 0x194   :  { %4191 = vst [vmem:[#allocation6_spill] sm:$0xff] %v3078_v8  ;;  %v1000_v3 = vadd.f32 %v999_v39, %v3078_v8 }
 0x195   :  { %v596_v46 = vpop.f32.mrf.mxu0 }
 0x196   :  { %v3083_v32 = vadd.f32 %v3009_v44, %v596_v46 }
 0x197   :  { %v598_v48 = vpop.f32.mrf.mxu0 }
 0x198   :  { %4192 = vst [vmem:[#allocation7_spill] sm:$0xff] %v3083_v32  ;;  %v1001_v16 = vadd.f32 %v1000_v3, %v3083_v32 }
 0x199   :  { %v601_v21 = vpop.f32.mrf.mxu0 }
 0x19a   :  { %v3088_v35 = vadd.f32 %v3016_v22, %v601_v21 }
 0x19b   :  { %v603_v11 = vpop.f32.mrf.mxu0 }
 0x19c   :  { %4193 = vst [vmem:[#allocation8_spill] sm:$0xff] %v3088_v35  ;;  %v1002_v44 = vadd.f32 %v1001_v16, %v3088_v35 }
 0x19d   :  { %v606_v14 = vpop.f32.mrf.mxu0 }
 0x19e   :  { %v917_v60 = vadd.f32 %v3023_v20, %v606_v14 }
 0x19f   :  { %v608_v26 = vpop.f32.mrf.mxu0 }
 0x1a0   :  { %v1003_v46 = vadd.f32 %v1002_v44, %v917_v60 }
 0x1a1   :  { %v611_v10 = vpop.f32.mrf.mxu0 }
 0x1a2   :  { %v922_v25 = vadd.f32 %v3030_v63, %v611_v10 }
 0x1a3   :  { %v613_v48 = vpop.f32.mrf.mxu0 }
 0x1a4   :  { %v1004_v58 = vadd.f32 %v1003_v46, %v922_v25 }
 0x1a5   :  { %v616_v53 = vpop.f32.mrf.mxu0 }
 0x1a6   :  { %v927_v22 = vadd.f32 %v3037_v5, %v616_v53 }
 0x1a7   :  { %v618_v21 = vpop.f32.mrf.mxu0 }
 0x1a8   :  { %v1005_v11 = vadd.f32 %v1004_v58, %v927_v22 }
 0x1a9   :  { %v621_v39 = vpop.f32.mrf.mxu0 }
 0x1aa   :  { %v932_v8 = vadd.f32 %v3044_v23, %v621_v39 }
 0x1ab   :  { %v623_v3 = vpop.f32.mrf.mxu0 }
 0x1ac   :  { %v1006_v32 = vadd.f32 %v1005_v11, %v932_v8 }
 0x1ad   :  { %v626_v20 = vpop.f32.mrf.mxu0 }
 0x1ae   :  { %v937_v14 = vadd.f32 %v3051_v59, %v626_v20 }
 0x1af   :  { %v628_v16 = vpop.f32.mrf.mxu0 }
 0x1b0   :  { %v1007_v26 = vadd.f32 %v1006_v32, %v937_v14 }
 0x1b1   :  { %v631_v44 = vpop.f32.mrf.mxu0 }
 0x1b2   :  { %v942_v63 = vadd.f32 %v3058_v62, %v631_v44 }
 0x1b3   :  { %v633_v10 = vpop.f32.mrf.mxu0 }
 0x1b4   :  { %v1008_v46 = vadd.f32 %v1007_v26, %v942_v63 }
 0x1b5   :  { %v636_v48 = vpop.f32.mrf.mxu0 }
 0x1b6   :  { %v947_v35 = vadd.f32 %v946_v45, %v636_v48 }
 0x1b7   :  { %v638_v5 = vpop.f32.mrf.mxu0 }
 0x1b8   :  { %v1009_v53 = vadd.f32 %v1008_v46, %v947_v35 }
 0x1b9   :  { %v641_v58 = vpop.f32.mrf.mxu0 }
 0x1ba   :  { %v952_v21 = vadd.f32 %v951_v33, %v641_v58 }
 0x1bb   :  { %v643_v52 = vpop.f32.mrf.mxu0 }
 0x1bc   :  { %v1010_v23 = vadd.f32 %v1009_v53, %v952_v21 }
 0x1bd   :  { %v646_v39 = vpop.f32.mrf.mxu0 }
 0x1be   :  { %v957_v11 = vadd.f32 %v956_v38, %v646_v39 }
 0x1bf   :  { %v648_v3 = vpop.f32.mrf.mxu0 }
 0x1c0   :  { %v1011_v49 = vadd.f32 %v1010_v23, %v957_v11 }
 0x1c1   :  { %v651_v59 = vpop.f32.mrf.mxu0 }
 0x1c2   :  { %v962_v20 = vadd.f32 %v961_v27, %v651_v59 }
 0x1c3   :  { %v653_v32 = vpop.f32.mrf.mxu0 }
 0x1c4   :  { %v1012_v16 = vadd.f32 %v1011_v49, %v962_v20 }
 0x1c6   :  { %v1013_v61 = vrot.slane %v1012_v16, 4 }
 0x1c8   :  { %v1014_v62 = vadd.f32 %v1013_v61, %v1012_v16 }
 0x1ca   :  { %v1015_v44 = vrot.slane %v1014_v62, 2 }
 0x1cc   :  { %v1016_v26 = vadd.f32 %v1015_v44, %v1014_v62 }
 0x1ce   :  { %v1017_v10 = vrot.slane %v1016_v26, 1 }
 0x1d0   :  { %v1018_v45 = vadd.f32 %v1017_v10, %v1016_v26 }
 0x1d2   :  { %v3099_v48 = vmul.f32 0.0025510204, %v1018_v45 }
 0x1d4   :  { %v3102_v33 = vsub.f32 %v917_v60, %v3099_v48  ;;  %v3105_v52 = vsub.f32 %v922_v25, %v3099_v48  ;;  %v3108_v38 = vsub.f32 %v927_v22, %v3099_v48  ;;  %v3111_v27 = vsub.f32 %v932_v8, %v3099_v48 }
 0x1d5   :  { %v3114_v61 = vsub.f32 %v937_v14, %v3099_v48  ;;  %v3117_v49 = vsub.f32 %v942_v63, %v3099_v48  ;;  %v3120_v46 = vsub.f32 %v947_v35, %v3099_v48  ;;  %v3123_v60 = vsub.f32 %v952_v21, %v3099_v48 }
 0x1d6   :  { %v3126_v25 = vsub.f32 %v957_v11, %v3099_v48  ;;  %v3129_v22 = vsub.f32 %v962_v20, %v3099_v48  ;;  %v3133_v8 = vsub.f32 %v2909_v19, %v3099_v48  ;;  %v3137_v14 = vsub.f32 %v2912_v24, %v3099_v48 }
 0x1d7   :  { %4194 = vst [vmem:[#allocation9_spill] sm:$0xff] %v3117_v49  ;;  %4195 = vst [vmem:[#allocation10_spill] sm:$0xff] %v3120_v46  ;;  %v3141_v35 = vsub.f32 %v2915_v29, %v3099_v48  ;;  %v3149_v53 = vsub.f32 %v2918_v34, %v3099_v48  ;;  %v3153_v19 = vsub.f32 %v2921_v0, %v3099_v48 }
 0x1d8   :  { %4196 = vst [vmem:[#allocation11_spill] sm:$0xff] %v3123_v60  ;;  %4197 = vst [vmem:[#allocation12_spill] sm:$0xff] %v3129_v22  ;;  %v1069_v63 = vmul.f32 %v3133_v8, %v3133_v8  ;;  %v1070_v5 = vmul.f32 %v3137_v14, %v3137_v14  ;;  %v3159_v29 = vsub.f32 %v2924_v43, %v3099_v48 }
 0x1d9   :  { %v1071_v24 = vmul.f32 %v3141_v35, %v3141_v35  ;;  %v1072_v21 = vmul.f32 %v3149_v53, %v3149_v53  ;;  %v3165_v34 = vsub.f32 %v2927_v47, %v3099_v48  ;;  %v1073_v0 = vmul.f32 %v3153_v19, %v3153_v19 }
 0x1da   :  { %v1118_v58 = vadd.f32 %v1070_v5, %v1069_v63  ;;  %v3171_v11 = vsub.f32 %v2930_v51, %v3099_v48  ;;  %v1074_v43 = vmul.f32 %v3159_v29, %v3159_v29  ;;  %v3177_v59 = vsub.f32 %v2932_v55, %v3099_v48 }
 0x1db   :  { %v1075_v47 = vmul.f32 %v3165_v34, %v3165_v34  ;;  %v3183_v32 = vsub.f32 %v2934_v2, %v3099_v48  ;;  %v3189_v62 = vsub.f32 %v2936_v7, %v3099_v48  ;;  %v3195_v26 = vsub.f32 %v2938_v13, %v3099_v48 }
 0x1dc   :  { %v1119_v23 = vadd.f32 %v1118_v58, %v1071_v24  ;;  %v1076_v51 = vmul.f32 %v3171_v11, %v3171_v11  ;;  %v1077_v55 = vmul.f32 %v3177_v59, %v3177_v59  ;;  %v3201_v45 = vsub.f32 %v2942_v18, %v3099_v48 }
 0x1dd   :  { %v1078_v2 = vmul.f32 %v3183_v32, %v3183_v32  ;;  %v1079_v7 = vmul.f32 %v3189_v62, %v3189_v62  ;;  %v3207_v5 = vsub.f32 %v2946_v12, %v3099_v48  ;;  %v1080_v13 = vmul.f32 %v3195_v26, %v3195_v26 }
 0x1de   :  { %v1120_v39 = vadd.f32 %v1119_v23, %v1072_v21  ;;  %v3213_v58 = vsub.f32 %v2950_v31, %v3099_v48  ;;  %v1081_v18 = vmul.f32 %v3201_v45, %v3201_v45  ;;  %v3219_v23 = vsub.f32 %v2954_v37, %v3099_v48 }
 0x1df   :  { %v1082_v12 = vmul.f32 %v3207_v5, %v3207_v5 }
 0x1e0   :  { %v1121_v3 = vadd.f32 %v1120_v39, %v1073_v0  ;;  %v3225_v39 = vsub.f32 %v2958_v42, %v3099_v48  ;;  %v1083_v31 = vmul.f32 %v3213_v58, %v3213_v58  ;;  %v1084_v37 = vmul.f32 %v3219_v23, %v3219_v23 }
 0x1e2   :  { %v1122_v20 = vadd.f32 %v1121_v3, %v1074_v43  ;;  %v3231_v3 = vsub.f32 %v2962_v50, %v3099_v48  ;;  %v1085_v42 = vmul.f32 %v3225_v39, %v3225_v39 }
 0x1e4   :  { %v1123_v16 = vadd.f32 %v1122_v20, %v1075_v47  ;;  %v3237_v20 = vsub.f32 %v2966_v57, %v3099_v48  ;;  %v1086_v50 = vmul.f32 %v3231_v3, %v3231_v3 }
 0x1e6   :  { %v1124_v44 = vadd.f32 %v1123_v16, %v1076_v51  ;;  %v3243_v16 = vsub.f32 %v2970_v1, %v3099_v48  ;;  %v1087_v57 = vmul.f32 %v3237_v20, %v3237_v20 }
 0x1e8   :  { %v1125_v10 = vadd.f32 %v1124_v44, %v1077_v55  ;;  %v3249_v44 = vsub.f32 %v2974_v9, %v3099_v48  ;;  %v1088_v1 = vmul.f32 %v3243_v16, %v3243_v16 }
 0x1ea   :  { %v1126_v63 = vadd.f32 %v1125_v10, %v1078_v2  ;;  %v3255_v10 = vsub.f32 %v2980_v17, %v3099_v48  ;;  %v1089_v9 = vmul.f32 %v3249_v44, %v3249_v44 }
 0x1ec   :  { %v1127_v24 = vadd.f32 %v1126_v63, %v1079_v7  ;;  %v3261_v63 = vsub.f32 %v2986_v28, %v3099_v48  ;;  %v1090_v17 = vmul.f32 %v3255_v10, %v3255_v10 }
 0x1ee   :  { %v1128_v21 = vadd.f32 %v1127_v24, %v1080_v13  ;;  %v3267_v24 = vsub.f32 %v2993_v41, %v3099_v48  ;;  %v1091_v28 = vmul.f32 %v3261_v63, %v3261_v63 }
 0x1f0   :  { %v1129_v0 = vadd.f32 %v1128_v21, %v1081_v18  ;;  %v3273_v21 = vsub.f32 %v3000_v56, %v3099_v48  ;;  %v1092_v41 = vmul.f32 %v3267_v24, %v3267_v24 }
 0x1f2   :  { %v1130_v43 = vadd.f32 %v1129_v0, %v1082_v12  ;;  %v3279_v0 = vsub.f32 %v3007_v6, %v3099_v48  ;;  %v1093_v56 = vmul.f32 %v3273_v21, %v3273_v21 }
 0x1f4   :  { %v1131_v47 = vadd.f32 %v1130_v43, %v1083_v31  ;;  %v3285_v43 = vsub.f32 %v3014_v54, %v3099_v48  ;;  %v1094_v6 = vmul.f32 %v3279_v0, %v3279_v0 }
 0x1f6   :  { %v1132_v51 = vadd.f32 %v1131_v47, %v1084_v37  ;;  %v3291_v47 = vsub.f32 %v3021_v36, %v3099_v48  ;;  %v1095_v54 = vmul.f32 %v3285_v43, %v3285_v43 }
 0x1f8   :  { %v1133_v55 = vadd.f32 %v1132_v51, %v1085_v42  ;;  %v3297_v51 = vsub.f32 %v3028_v30, %v3099_v48  ;;  %v1096_v36 = vmul.f32 %v3291_v47, %v3291_v47 }
 0x1fa   :  { %v1134_v2 = vadd.f32 %v1133_v55, %v1086_v50  ;;  %v3303_v55 = vsub.f32 %v3035_v4, %v3099_v48  ;;  %v1097_v30 = vmul.f32 %v3297_v51, %v3297_v51 }
 0x1fc   :  { %v1135_v7 = vadd.f32 %v1134_v2, %v1087_v57  ;;  %v3309_v2 = vsub.f32 %v3042_v15, %v3099_v48  ;;  %v1098_v4 = vmul.f32 %v3303_v55, %v3303_v55 }
 0x1fe   :  { %v1136_v13 = vadd.f32 %v1135_v7, %v1088_v1  ;;  %v3315_v7 = vsub.f32 %v3049_v40, %v3099_v48  ;;  %v1099_v15 = vmul.f32 %v3309_v2, %v3309_v2 }
 0x200   :  { %v1137_v18 = vadd.f32 %v1136_v13, %v1089_v9  ;;  %v4198_v13 = vld [vmem:[#allocation2_spill] sm:$0xff]  ;;  %v1100_v40 = vmul.f32 %v3315_v7, %v3315_v7 }
 0x202   :  { %v1138_v12 = vadd.f32 %v1137_v18, %v1090_v17  ;;  %v3321_v17 = vsub.f32 %v4198_v13, %v3099_v48 }
 0x204   :  { %v1139_v31 = vadd.f32 %v1138_v12, %v1091_v28  ;;  %v4199_v28 = vld [vmem:[#allocation3_spill] sm:$0xff] }
 0x205   :  { %v3327_v12 = vsub.f32 %v4199_v28, %v3099_v48  ;;  %v4204_v28 = vld [vmem:[#allocation8_spill] sm:$0xff] }
 0x206   :  { %v1140_v37 = vadd.f32 %v1139_v31, %v1092_v41  ;;  %v4200_v31 = vld [vmem:[#allocation4_spill] sm:$0xff] }
 0x208   :  { %v1141_v42 = vadd.f32 %v1140_v37, %v1093_v56  ;;  %v3333_v56 = vsub.f32 %v4200_v31, %v3099_v48  ;;  %v1101_v37 = vmul.f32 %v3321_v17, %v3321_v17 }
 0x20a   :  { %v1142_v50 = vadd.f32 %v1141_v42, %v1094_v6  ;;  %v4201_v42 = vld [vmem:[#allocation5_spill] sm:$0xff] }
 0x20c   :  { %v1143_v57 = vadd.f32 %v1142_v50, %v1095_v54  ;;  %v3339_v54 = vsub.f32 %v4201_v42, %v3099_v48  ;;  %v1102_v50 = vmul.f32 %v3327_v12, %v3327_v12 }
 0x20e   :  { %v1144_v1 = vadd.f32 %v1143_v57, %v1096_v36  ;;  %v4202_v57 = vld [vmem:[#allocation6_spill] sm:$0xff] }
 0x210   :  { %v1145_v9 = vadd.f32 %v1144_v1, %v1097_v30  ;;  %v3345_v30 = vsub.f32 %v4202_v57, %v3099_v48  ;;  %v1103_v1 = vmul.f32 %v3333_v56, %v3333_v56 }
 0x212   :  { %v1146_v18 = vadd.f32 %v1145_v9, %v1098_v4  ;;  %v4203_v9 = vld [vmem:[#allocation7_spill] sm:$0xff] }
 0x213   :  { %v3351_v13 = vsub.f32 %v4203_v9, %v3099_v48 }
 0x214   :  { %v1147_v41 = vadd.f32 %v1146_v18, %v1099_v15  ;;  %v1104_v15 = vmul.f32 %v3339_v54, %v3339_v54 }
 0x216   :  { %v1148_v6 = vadd.f32 %v1147_v41, %v1100_v40  ;;  %v3357_v40 = vsub.f32 %v4204_v28, %v3099_v48  ;;  %v1105_v41 = vmul.f32 %v3345_v30, %v3345_v30  ;;  %v1109_v48 = vmul.f32 %v3105_v52, %v3105_v52 }
 0x217   :  { %v1112_v28 = vmul.f32 %v3114_v61, %v3114_v61 }
 0x218   :  { %v1149_v36 = vadd.f32 %v1148_v6, %v1101_v37  ;;  %v1106_v37 = vmul.f32 %v3351_v13, %v3351_v13  ;;  %v1107_v42 = vmul.f32 %v3357_v40, %v3357_v40 }
 0x21a   :  { %v1150_v4 = vadd.f32 %v1149_v36, %v1102_v50  ;;  %v1108_v36 = vmul.f32 %v3102_v33, %v3102_v33 }
 0x21c   :  { %v1151_v18 = vadd.f32 %v1150_v4, %v1103_v1  ;;  %v1110_v4 = vmul.f32 %v3108_v38, %v3108_v38 }
 0x21e   :  { %v1152_v31 = vadd.f32 %v1151_v18, %v1104_v15  ;;  %v1111_v15 = vmul.f32 %v3111_v27, %v3111_v27 }
 0x220   :  { %v1153_v6 = vadd.f32 %v1152_v31, %v1105_v41  ;;  %v1113_v31 = vmul.f32 %v3117_v49, %v3117_v49 }
 0x222   :  { %v1154_v50 = vadd.f32 %v1153_v6, %v1106_v37  ;;  %v1114_v6 = vmul.f32 %v3120_v46, %v3120_v46 }
 0x224   :  { %v1155_v57 = vadd.f32 %v1154_v50, %v1107_v42  ;;  %v1115_v50 = vmul.f32 %v3123_v60, %v3123_v60  ;;  %v1177_v60 = vlaneseq }
 0x226   :  { %v1156_v1 = vadd.f32 %v1155_v57, %v1108_v36  ;;  %v1116_v57 = vmul.f32 %v3126_v25, %v3126_v25 }
 0x228   :  { %v1157_v9 = vadd.f32 %v1156_v1, %v1109_v48  ;;  %v1117_v1 = vmul.f32 %v3129_v22, %v3129_v22 }
 0x22a   :  { %v1158_v18 = vadd.f32 %v1157_v9, %v1110_v4 }
 0x22c   :  { %v1159_v41 = vadd.f32 %v1158_v18, %v1111_v15 }
 0x22e   :  { %v1160_v37 = vadd.f32 %v1159_v41, %v1112_v28 }
 0x230   :  { %v1161_v42 = vadd.f32 %v1160_v37, %v1113_v31 }
 0x232   :  { %v1162_v36 = vadd.f32 %v1161_v42, %v1114_v6  ;;  %v1178_v6 = vshrl.u32 %v1177_v60, 7 }
 0x234   :  { %v1163_v48 = vadd.f32 %v1162_v36, %v1115_v50  ;;  %v1173_v50 = vld [vmem:[%s4142_s2] sm:$0x1]  ;;  %v1179_v22 = vsub.s32 0, %v1178_v6 }
 0x236   :  { %v1164_v4 = vadd.f32 %v1163_v48, %v1116_v57 }
 0x238   :  { %v1165_v9 = vadd.f32 %v1164_v4, %v1117_v1 }
 0x23a   :  { %v1166_v15 = vrot.slane %v1165_v9, 4 }
 0x23c   :  { %v1167_v18 = vadd.f32 %v1166_v15, %v1165_v9 }
 0x23e   :  { %v1168_v28 = vrot.slane %v1167_v18, 2 }
 0x240   :  { %v1169_v41 = vadd.f32 %v1168_v28, %v1167_v18 }
 0x242   :  { %v1170_v49 = vrot.slane %v1169_v41, 1 }
 0x244   :  { %v1171_v46 = vadd.f32 %v1170_v49, %v1169_v41 }
 0x246   :  { %v1172_v31 = vmul.f32 0.0025510204, %v1171_v46 }
 0x248   :  { %v1174_v37 = vadd.f32 3.0, %v1172_v31  ;;  %v4209_v31 = vld [vmem:[#allocation9_spill] sm:$0xff] }
 0x24a   :  { %1940 = vrsqrt.f32 %v1174_v37 }
 0x257   :  { %v1941_v42 = vpop.eup %1940 }
 0x258   :  { %v1176_v36 = vmul.f32 %v1941_v42, %v1173_v50 }
 0x25a   :  { %v3388_v57 = vrot.slane %v1176_v36, %v1179_v22  ;;  %v4211_v36 = vld [vmem:[#allocation11_spill] sm:$0xff] }
 0x25c   :  { %v1181_v48 = vmul.f32 %v3388_v57, %v3133_v8  ;;  %v1182_v49 = vmul.f32 %v3388_v57, %v3137_v14  ;;  %v1183_v46 = vmul.f32 %v3388_v57, %v3141_v35  ;;  %v1184_v60 = vmul.f32 %v3388_v57, %v3149_v53 }
 0x25d   :  { %v1185_v1 = vmul.f32 %v3388_v57, %v3153_v19  ;;  %v1186_v4 = vmul.f32 %v3388_v57, %v3159_v29  ;;  %v1187_v22 = vmul.f32 %v3388_v57, %v3165_v34  ;;  %v1188_v8 = vmul.f32 %v3388_v57, %v3171_v11 }
 0x25e   :  { %v1189_v14 = vmul.f32 %v3388_v57, %v3177_v59  ;;  %v1190_v35 = vmul.f32 %v3388_v57, %v3183_v32  ;;  %v1191_v53 = vmul.f32 %v3388_v57, %v3189_v62  ;;  %v1192_v19 = vmul.f32 %v3388_v57, %v3195_v26 }
 0x25f   :  { %v1193_v29 = vmul.f32 %v3388_v57, %v3201_v45  ;;  %v3418_v34 = vmul.f32 %v3388_v57, %v3207_v5  ;;  %v3422_v11 = vmul.f32 %v3388_v57, %v3213_v58  ;;  %v3426_v59 = vmul.f32 %v3388_v57, %v3219_v23 }
 0x260   :  { %v3430_v32 = vmul.f32 %v3388_v57, %v3225_v39  ;;  %v3434_v62 = vmul.f32 %v3388_v57, %v3231_v3  ;;  %v3438_v26 = vmul.f32 %v3388_v57, %v3237_v20  ;;  %v3442_v45 = vmul.f32 %v3388_v57, %v3243_v16  ;;  %v3467_v20 = vld [vmem:[%s4142_s2 + $0x1] ss:$0 sm:$0xff] }
 0x261   :  { %v3446_v5 = vmul.f32 %v3388_v57, %v3249_v44  ;;  %v3450_v58 = vmul.f32 %v3388_v57, %v3255_v10  ;;  %v3454_v23 = vmul.f32 %v3388_v57, %v3261_v63  ;;  %v3458_v39 = vmul.f32 %v3388_v57, %v3267_v24 }
 0x262   :  { %v3462_v3 = vmul.f32 %v3388_v57, %v3273_v21  ;;  %v3471_v16 = vmul.f32 %v3388_v57, %v3279_v0  ;;  %v3475_v44 = vmul.f32 %v3388_v57, %v3285_v43  ;;  %v3479_v10 = vmul.f32 %v3388_v57, %v3291_v47 }
 0x263   :  { %v3483_v63 = vmul.f32 %v3388_v57, %v3297_v51  ;;  %v3487_v24 = vmul.f32 %v3388_v57, %v3303_v55  ;;  %v3491_v21 = vmul.f32 %v3388_v57, %v3309_v2  ;;  %v3495_v0 = vmul.f32 %v3388_v57, %v3315_v7 }
 0x264   :  { %v3499_v43 = vmul.f32 %v3388_v57, %v3321_v17  ;;  %v3503_v47 = vmul.f32 %v3388_v57, %v3327_v12  ;;  %v3507_v51 = vmul.f32 %v3388_v57, %v3333_v56  ;;  %v3511_v55 = vmul.f32 %v3388_v57, %v3339_v54 }
 0x265   :  { %v3514_v2 = vadd.f32 %v3467_v20, %v1181_v48  ;;  %v3518_v7 = vmul.f32 %v3388_v57, %v3345_v30  ;;  %v3521_v17 = vadd.f32 %v3467_v20, %v1182_v49  ;;  %v3524_v12 = vadd.f32 %v3467_v20, %v1183_v46 }
 0x266   :  { %v3527_v56 = vadd.f32 %v3467_v20, %v1184_v60  ;;  %v3531_v54 = vmul.f32 %v3388_v57, %v3351_v13  ;;  %v3535_v9 = vmul.f32 %v3388_v57, %v3357_v40  ;;  %v3539_v30 = vmul.f32 %v3388_v57, %v3102_v33 }
 0x267   :  { %v3542_v15 = vadd.f32 %v3467_v20, %v1185_v1  ;;  %v3546_v18 = vmul.f32 %v3388_v57, %v3105_v52  ;;  %v3550_v28 = vmul.f32 %v3388_v57, %v3108_v38  ;;  %v3554_v13 = vmul.f32 %v3388_v57, %v3111_v27  ;;  %v4212_v1 = vld [vmem:[#allocation12_spill] sm:$0xff] }
 0x268   :  { %4205 = vst [vmem:[#allocation2_spill] sm:$0xff] %v3527_v56  ;;  %v3557_v40 = vadd.f32 %v3467_v20, %v1186_v4  ;;  %v3561_v33 = vmul.f32 %v3388_v57, %v3114_v61  ;;  %v3564_v41 = vadd.f32 %v3467_v20, %v1187_v22  ;;  %v3567_v52 = vadd.f32 %v3467_v20, %v1188_v8  ;;  %v4210_v61 = vld [vmem:[#allocation10_spill] sm:$0xff] }
 0x269   :  { %4206 = vst [vmem:[#allocation3_spill] sm:$0xff] %v3542_v15  ;;  %v1284_v38 = vsub.f32 0.0, %v3514_v2  ;;  %v3572_v37 = vmul.f32 %v3388_v57, %v4209_v31  ;;  %v1285_v27 = vsub.f32 0.0, %v3521_v17  ;;  %v1286_v6 = vsub.f32 0.0, %v3524_v12 }
 0x26a   :  { %4207 = vst [vmem:[#allocation4_spill] sm:$0xff] %v3557_v40  ;;  %4208 = vst [vmem:[#allocation5_spill] sm:$0xff] %v3567_v52  ;;  %v1287_v42 = vsub.f32 0.0, %v3527_v56  ;;  %v3579_v50 = vmul.f32 %v3388_v57, %v4210_v61  ;;  %v3583_v48 = vmul.f32 %v3388_v57, %v4211_v36  ;;  %v3586_v49 = vadd.f32 %v3467_v20, %v1189_v14 }
 0x26b   :  { %v1288_v46 = vsub.f32 0.0, %v3542_v15  ;;  %v3591_v60 = vmul.f32 %v3388_v57, %v3126_v25  ;;  %v3595_v4 = vmul.f32 %v3388_v57, %v4212_v1  ;;  %v3598_v22 = vadd.f32 %v3467_v20, %v1190_v35 }
 0x26c   :  { %v1289_v8 = vsub.f32 0.0, %v3557_v40  ;;  %v3602_v31 = vadd.f32 %v3467_v20, %v1191_v53  ;;  %v1290_v14 = vsub.f32 0.0, %v3564_v41  ;;  %v1291_v61 = vsub.f32 0.0, %v3567_v52 }
 0x26d   :  { %v1333_v36 = vmul.f32 1.442695, %v1284_v38  ;;  %v3607_v25 = vadd.f32 %v3467_v20, %v1192_v19  ;;  %v1335_v15 = vmul.f32 1.442695, %v1285_v27  ;;  %v1337_v56 = vmul.f32 1.442695, %v1286_v6 }
 0x26e   :  { %v1339_v57 = vmul.f32 1.442695, %v1287_v42  ;;  %v3610_v1 = vadd.f32 %v3467_v20, %v1193_v29  ;;  %v1292_v35 = vsub.f32 0.0, %v3586_v49  ;;  %v1341_v40 = vmul.f32 1.442695, %v1288_v46 }
 0x26f   :  { %1942 = vpow2.f32 %v1333_v36  ;;  %v3615_v53 = vadd.f32 %v3467_v20, %v3418_v34  ;;  %v1293_v52 = vsub.f32 0.0, %v3598_v22  ;;  %v1343_v38 = vmul.f32 1.442695, %v1289_v8 }
 0x270   :  { %1944 = vpow2.f32 %v1335_v15  ;;  %v3620_v19 = vadd.f32 %v3467_v20, %v3422_v11  ;;  %v1294_v27 = vsub.f32 0.0, %v3602_v31  ;;  %v1345_v29 = vmul.f32 1.442695, %v1290_v14 }
 0x271   :  { %1946 = vpow2.f32 %v1337_v56  ;;  %v3625_v6 = vadd.f32 %v3467_v20, %v3426_v59  ;;  %v1295_v42 = vsub.f32 0.0, %v3607_v25  ;;  %v1347_v34 = vmul.f32 1.442695, %v1291_v61 }
 0x272   :  { %1948 = vpow2.f32 %v1339_v57  ;;  %v3630_v15 = vadd.f32 %v3467_v20, %v3430_v32  ;;  %v1296_v46 = vsub.f32 0.0, %v3610_v1  ;;  %v1349_v11 = vmul.f32 1.442695, %v1292_v35 }
 0x273   :  { %1950 = vpow2.f32 %v1341_v40  ;;  %v3635_v56 = vadd.f32 %v3467_v20, %v3434_v62  ;;  %v1297_v8 = vsub.f32 0.0, %v3615_v53  ;;  %v1351_v59 = vmul.f32 1.442695, %v1293_v52 }
 0x274   :  { %1952 = vpow2.f32 %v1343_v38  ;;  %v3640_v14 = vadd.f32 %v3467_v20, %v3438_v26  ;;  %v1298_v61 = vsub.f32 0.0, %v3620_v19  ;;  %v1353_v32 = vmul.f32 1.442695, %v1294_v27 }
 0x275   :  { %1954 = vpow2.f32 %v1345_v29  ;;  %v3645_v40 = vadd.f32 %v3467_v20, %v3442_v45  ;;  %v1299_v36 = vsub.f32 0.0, %v3625_v6  ;;  %v1355_v62 = vmul.f32 1.442695, %v1295_v42 }
 0x276   :  { %1956 = vpow2.f32 %v1347_v34  ;;  %v3650_v57 = vadd.f32 %v3467_v20, %v3446_v5  ;;  %v1300_v52 = vsub.f32 0.0, %v3630_v15  ;;  %v1357_v26 = vmul.f32 1.442695, %v1296_v46 }
 0x277   :  { %1958 = vpow2.f32 %v1349_v11  ;;  %v3655_v35 = vadd.f32 %v3467_v20, %v3450_v58  ;;  %v1301_v38 = vsub.f32 0.0, %v3635_v56  ;;  %v1359_v45 = vmul.f32 1.442695, %v1297_v8 }
 0x278   :  { %4213 = vst [vmem:[#allocation6_spill] sm:$0xff] %v3650_v57  ;;  %1960 = vpow2.f32 %v1351_v59  ;;  %v3660_v27 = vadd.f32 %v3467_v20, %v3454_v23  ;;  %v1302_v29 = vsub.f32 0.0, %v3640_v14  ;;  %v1361_v5 = vmul.f32 1.442695, %v1298_v61 }
 0x279   :  { %4214 = vst [vmem:[#allocation7_spill] sm:$0xff] %v3655_v35  ;;  %1962 = vpow2.f32 %v1353_v32  ;;  %v3665_v42 = vadd.f32 %v3467_v20, %v3458_v39  ;;  %v1303_v34 = vsub.f32 0.0, %v3645_v40  ;;  %v1363_v58 = vmul.f32 1.442695, %v1299_v36 }
 0x27a   :  { %4215 = vst [vmem:[#allocation8_spill] sm:$0xff] %v3660_v27  ;;  %1964 = vpow2.f32 %v1355_v62  ;;  %v3670_v46 = vadd.f32 %v3467_v20, %v3462_v3  ;;  %v1304_v11 = vsub.f32 0.0, %v3650_v57  ;;  %v1365_v23 = vmul.f32 1.442695, %v1300_v52 }
 0x27b   :  { %4216 = vst [vmem:[#allocation9_spill] sm:$0xff] %v3665_v42  ;;  %1966 = vpow2.f32 %v1357_v26  ;;  %v3677_v59 = vadd.f32 %v3467_v20, %v3471_v16  ;;  %v1305_v39 = vsub.f32 0.0, %v3655_v35  ;;  %v1367_v61 = vmul.f32 1.442695, %v1301_v38 }
 0x27c   :  { %4217 = vst [vmem:[#allocation10_spill] sm:$0xff] %v3670_v46  ;;  %v3673_v8 = vpop.eup %1942  ;;  %1968 = vpow2.f32 %v1359_v45  ;;  %v3684_v3 = vadd.f32 %v3467_v20, %v3475_v44  ;;  %v1306_v36 = vsub.f32 0.0, %v3660_v27  ;;  %v1369_v62 = vmul.f32 1.442695, %v1302_v29 }
 0x27d   :  { %4218 = vst [vmem:[#allocation11_spill] sm:$0xff] %v3677_v59  ;;  %v3680_v32 = vpop.eup %1944  ;;  %1970 = vpow2.f32 %v1361_v5  ;;  %v3691_v16 = vadd.f32 %v3467_v20, %v3479_v10  ;;  %v1307_v26 = vsub.f32 0.0, %v3665_v42  ;;  %v1371_v38 = vmul.f32 1.442695, %v1303_v34 }
 0x27e   :  { %4219 = vst [vmem:[#allocation12_spill] sm:$0xff] %v3684_v3  ;;  %v3687_v52 = vpop.eup %1946  ;;  %1972 = vpow2.f32 %v1363_v58  ;;  %v3698_v44 = vadd.f32 %v3467_v20, %v3483_v63  ;;  %v1308_v27 = vsub.f32 0.0, %v3670_v46  ;;  %v1373_v29 = vmul.f32 1.442695, %v1304_v11 }
 0x27f   :  { %4220 = vst [vmem:[#allocation13_spill] sm:$0xff] %v3691_v16  ;;  %v3694_v45 = vpop.eup %1948  ;;  %1974 = vpow2.f32 %v1365_v23  ;;  %v3705_v10 = vadd.f32 %v3467_v20, %v3487_v24  ;;  %v1309_v42 = vsub.f32 0.0, %v3677_v59  ;;  %v1375_v34 = vmul.f32 1.442695, %v1305_v39 }
 0x280   :  { %4221 = vst [vmem:[#allocation14_spill] sm:$0xff] %v3698_v44  ;;  %v3701_v5 = vpop.eup %1950  ;;  %1976 = vpow2.f32 %v1367_v61  ;;  %v3712_v63 = vadd.f32 %v3467_v20, %v3491_v21  ;;  %v1310_v46 = vsub.f32 0.0, %v3684_v3  ;;  %v1377_v11 = vmul.f32 1.442695, %v1306_v36 }
 0x281   :  { %4222 = vst [vmem:[#allocation15_spill] sm:$0xff] %v3705_v10  ;;  %v3708_v58 = vpop.eup %1952  ;;  %1978 = vpow2.f32 %v1369_v62  ;;  %v3719_v24 = vadd.f32 %v3467_v20, %v3495_v0  ;;  %v1311_v59 = vsub.f32 0.0, %v3691_v16  ;;  %v1379_v39 = vmul.f32 1.442695, %v1307_v26 }
 0x282   :  { %4223 = vst [vmem:[#allocation16_spill] sm:$0xff] %v3712_v63  ;;  %v3715_v23 = vpop.eup %1954  ;;  %1980 = vpow2.f32 %v1371_v38  ;;  %v3726_v21 = vadd.f32 %v3467_v20, %v3499_v43  ;;  %v1312_v3 = vsub.f32 0.0, %v3698_v44  ;;  %v1381_v36 = vmul.f32 1.442695, %v1308_v27 }
 0x283   :  { %4224 = vst [vmem:[#allocation17_spill] sm:$0xff] %v3719_v24  ;;  %v3722_v61 = vpop.eup %1956  ;;  %1982 = vpow2.f32 %v1373_v29  ;;  %v3733_v0 = vadd.f32 %v3467_v20, %v3503_v47  ;;  %v1313_v16 = vsub.f32 0.0, %v3705_v10  ;;  %v1383_v26 = vmul.f32 1.442695, %v1309_v42 }
 0x284   :  { %4225 = vst [vmem:[#allocation18_spill] sm:$0xff] %v3726_v21  ;;  %v3729_v62 = vpop.eup %1958  ;;  %1984 = vpow2.f32 %v1375_v34  ;;  %v3740_v43 = vadd.f32 %v3467_v20, %v3507_v51  ;;  %v1314_v44 = vsub.f32 0.0, %v3712_v63  ;;  %v1385_v27 = vmul.f32 1.442695, %v1310_v46 }
 0x285   :  { %4226 = vst [vmem:[#allocation19_spill] sm:$0xff] %v3733_v0  ;;  %v3736_v38 = vpop.eup %1960  ;;  %1986 = vpow2.f32 %v1377_v11  ;;  %v3747_v47 = vadd.f32 %v3467_v20, %v3511_v55  ;;  %v1315_v10 = vsub.f32 0.0, %v3719_v24  ;;  %v1387_v42 = vmul.f32 1.442695, %v1311_v59 }
 0x286   :  { %4227 = vst [vmem:[#allocation20_spill] sm:$0xff] %v3740_v43  ;;  %v3743_v29 = vpop.eup %1962  ;;  %1988 = vpow2.f32 %v1379_v39  ;;  %v3754_v51 = vadd.f32 %v3467_v20, %v3518_v7  ;;  %v1316_v63 = vsub.f32 0.0, %v3726_v21  ;;  %v1389_v46 = vmul.f32 1.442695, %v1312_v3 }
 0x287   :  { %4228 = vst [vmem:[#allocation21_spill] sm:$0xff] %v3747_v47  ;;  %v3750_v34 = vpop.eup %1964  ;;  %1990 = vpow2.f32 %v1381_v36  ;;  %v3761_v55 = vadd.f32 %v3467_v20, %v3531_v54  ;;  %v1317_v24 = vsub.f32 0.0, %v3733_v0  ;;  %v1391_v59 = vmul.f32 1.442695, %v1313_v16 }
 0x288   :  { %4229 = vst [vmem:[#allocation22_spill] sm:$0xff] %v3754_v51  ;;  %v3757_v11 = vpop.eup %1966  ;;  %1992 = vpow2.f32 %v1383_v26  ;;  %v3768_v7 = vadd.f32 %v3467_v20, %v3535_v9  ;;  %v1318_v21 = vsub.f32 0.0, %v3740_v43  ;;  %v1393_v3 = vmul.f32 1.442695, %v1314_v44 }
 0x289   :  { %4230 = vst [vmem:[#allocation23_spill] sm:$0xff] %v3761_v55  ;;  %v3764_v39 = vpop.eup %1968  ;;  %1994 = vpow2.f32 %v1385_v27  ;;  %v3775_v54 = vadd.f32 %v3467_v20, %v3539_v30  ;;  %v1319_v0 = vsub.f32 0.0, %v3747_v47  ;;  %v1395_v16 = vmul.f32 1.442695, %v1315_v10 }
 0x28a   :  { %4231 = vst [vmem:[#allocation24_spill] sm:$0xff] %v3768_v7  ;;  %v3771_v36 = vpop.eup %1970  ;;  %1996 = vpow2.f32 %v1387_v42  ;;  %v3782_v9 = vadd.f32 %v3467_v20, %v3546_v18  ;;  %v1320_v43 = vsub.f32 0.0, %v3754_v51  ;;  %v1397_v44 = vmul.f32 1.442695, %v1316_v63 }
 0x28b   :  { %4232 = vst [vmem:[#allocation25_spill] sm:$0xff] %v3775_v54  ;;  %v3778_v26 = vpop.eup %1972  ;;  %1998 = vpow2.f32 %v1389_v46  ;;  %v3789_v30 = vadd.f32 %v3467_v20, %v3550_v28  ;;  %v1321_v47 = vsub.f32 0.0, %v3761_v55  ;;  %v1399_v10 = vmul.f32 1.442695, %v1317_v24 }
 0x28c   :  { %4233 = vst [vmem:[#allocation26_spill] sm:$0xff] %v3782_v9  ;;  %v3785_v27 = vpop.eup %1974  ;;  %2000 = vpow2.f32 %v1391_v59  ;;  %v3796_v18 = vadd.f32 %v3467_v20, %v3554_v13  ;;  %v1322_v51 = vsub.f32 0.0, %v3768_v7  ;;  %v1401_v63 = vmul.f32 1.442695, %v1318_v21 }
 0x28d   :  { %4234 = vst [vmem:[#allocation27_spill] sm:$0xff] %v3789_v30  ;;  %v3792_v42 = vpop.eup %1976  ;;  %2002 = vpow2.f32 %v1393_v3  ;;  %v3803_v28 = vadd.f32 %v3467_v20, %v3561_v33  ;;  %v1323_v55 = vsub.f32 0.0, %v3775_v54  ;;  %v1403_v24 = vmul.f32 1.442695, %v1319_v0 }
 0x28e   :  { %4235 = vst [vmem:[#allocation28_spill] sm:$0xff] %v3796_v18  ;;  %v3799_v46 = vpop.eup %1978  ;;  %2004 = vpow2.f32 %v1395_v16  ;;  %v3810_v13 = vadd.f32 %v3467_v20, %v3572_v37  ;;  %v1324_v7 = vsub.f32 0.0, %v3782_v9  ;;  %v1405_v21 = vmul.f32 1.442695, %v1320_v43 }
 0x28f   :  { %4236 = vst [vmem:[#allocation29_spill] sm:$0xff] %v3803_v28  ;;  %v3806_v59 = vpop.eup %1980  ;;  %2006 = vpow2.f32 %v1397_v44  ;;  %v3817_v33 = vadd.f32 %v3467_v20, %v3579_v50  ;;  %v1325_v54 = vsub.f32 0.0, %v3789_v30  ;;  %v1407_v0 = vmul.f32 1.442695, %v1321_v47 }
 0x290   :  { %4237 = vst [vmem:[#allocation30_spill] sm:$0xff] %v3810_v13  ;;  %v3813_v3 = vpop.eup %1982  ;;  %2008 = vpow2.f32 %v1399_v10  ;;  %v3824_v37 = vadd.f32 %v3467_v20, %v3583_v48  ;;  %v1326_v9 = vsub.f32 0.0, %v3796_v18  ;;  %v1409_v43 = vmul.f32 1.442695, %v1322_v51 }
 0x291   :  { %4238 = vst [vmem:[#allocation31_spill] sm:$0xff] %v3817_v33  ;;  %v3820_v16 = vpop.eup %1984  ;;  %2010 = vpow2.f32 %v1401_v63  ;;  %v3831_v50 = vadd.f32 %v3467_v20, %v3591_v60  ;;  %v1327_v30 = vsub.f32 0.0, %v3803_v28  ;;  %v1411_v47 = vmul.f32 1.442695, %v1323_v55 }
 0x292   :  { %4239 = vst [vmem:[#allocation32_spill] sm:$0xff] %v3824_v37  ;;  %v3827_v44 = vpop.eup %1986  ;;  %2012 = vpow2.f32 %v1403_v24  ;;  %v3838_v48 = vadd.f32 %v3467_v20, %v3595_v4  ;;  %v1328_v18 = vsub.f32 0.0, %v3810_v13  ;;  %v1413_v51 = vmul.f32 1.442695, %v1324_v7 }
 0x293   :  { %4240 = vst [vmem:[#allocation33_spill] sm:$0xff] %v3831_v50  ;;  %v3834_v10 = vpop.eup %1988  ;;  %2014 = vpow2.f32 %v1405_v21  ;;  %v1329_v35 = vsub.f32 0.0, %v3817_v33  ;;  %v1415_v60 = vmul.f32 1.442695, %v1325_v54  ;;  %v1330_v55 = vsub.f32 0.0, %v3824_v37 }
 0x294   :  { %v3841_v63 = vpop.eup %1990  ;;  %2016 = vpow2.f32 %v1407_v0  ;;  %v1417_v24 = vmul.f32 1.442695, %v1326_v9  ;;  %v1331_v20 = vsub.f32 0.0, %v3831_v50  ;;  %v1419_v4 = vmul.f32 1.442695, %v1327_v30 }
 0x295   :  { %v3844_v57 = vpop.eup %1992  ;;  %2018 = vpow2.f32 %v1409_v43  ;;  %v1332_v7 = vsub.f32 0.0, %v3838_v48  ;;  %v1421_v33 = vmul.f32 1.442695, %v1328_v18  ;;  %v1423_v54 = vmul.f32 1.442695, %v1329_v35 }
 0x296   :  { %v3847_v28 = vpop.eup %1994  ;;  %2020 = vpow2.f32 %v1411_v47  ;;  %v1425_v9 = vmul.f32 1.442695, %v1330_v55  ;;  %v1427_v50 = vmul.f32 1.442695, %v1331_v20  ;;  %v1431_v18 = vadd.f32 1.0, %v3673_v8 }
 0x297   :  { %v3850_v21 = vpop.eup %1996  ;;  %2022 = vpow2.f32 %v1413_v51  ;;  %v1429_v30 = vmul.f32 1.442695, %v1332_v7  ;;  %v1432_v35 = vadd.f32 1.0, %v3680_v32  ;;  %v1433_v55 = vadd.f32 1.0, %v3687_v52 }
 0x298   :  { %v3853_v0 = vpop.eup %1998  ;;  %2024 = vpow2.f32 %v1415_v60  ;;  %v1436_v7 = vadd.f32 1.0, %v3708_v58  ;;  %v1440_v58 = vadd.f32 1.0, %v3736_v38  ;;  %v1444_v38 = vadd.f32 1.0, %v3764_v39 }
 0x299   :  { %v3855_v13 = vpop.eup %2000  ;;  %2026 = vpow2.f32 %v1417_v24 }
 0x29a   :  { %v3857_v43 = vpop.eup %2002  ;;  %2028 = vpow2.f32 %v1419_v4  ;;  %v1435_v4 = vadd.f32 1.0, %v3701_v5  ;;  %v1439_v5 = vadd.f32 1.0, %v3729_v62  ;;  %v1443_v62 = vadd.f32 1.0, %v3757_v11 }
 0x29b   :  { %v3859_v47 = vpop.eup %2004  ;;  %2030 = vpow2.f32 %v1421_v33  ;;  %v1434_v33 = vadd.f32 1.0, %v3694_v45  ;;  %v1447_v11 = vadd.f32 1.0, %v3785_v27  ;;  %v1451_v27 = vadd.f32 1.0, %v3813_v3  ;;  %v4242_v3 = vld [vmem:[#allocation3_spill] sm:$0xff] }
 0x29c   :  { %v3861_v37 = vpop.eup %2006  ;;  %2032 = vpow2.f32 %v1423_v54  ;;  %v1438_v54 = vadd.f32 1.0, %v3722_v61  ;;  %v1442_v61 = vadd.f32 1.0, %v3750_v34  ;;  %v1446_v34 = vadd.f32 1.0, %v3778_v26 }
 0x29d   :  { %v3864_v51 = vpop.eup %2008  ;;  %2034 = vpow2.f32 %v1425_v9 }
 0x29e   :  { %v3867_v60 = vpop.eup %2010  ;;  %2036 = vpow2.f32 %v1427_v50  ;;  %v1437_v50 = vadd.f32 1.0, %v3715_v23  ;;  %v1441_v23 = vadd.f32 1.0, %v3743_v29  ;;  %v1445_v29 = vadd.f32 1.0, %v3771_v36 }
 0x29f   :  { %v3870_v24 = vpop.eup %2012  ;;  %2038 = vpow2.f32 %v1429_v30 }
 0x2a0   :  { %v3873_v20 = vpop.eup %2014  ;;  %2040 = vrcp.f32 %v1431_v18 }
 0x2a1   :  { %v3876_v8 = vpop.eup %2016  ;;  %2042 = vrcp.f32 %v1432_v35 }
 0x2a2   :  { %v3879_v32 = vpop.eup %2018  ;;  %2044 = vrcp.f32 %v1433_v55 }
 0x2a3   :  { %v3882_v52 = vpop.eup %2020  ;;  %2046 = vrcp.f32 %v1434_v33 }
 0x2a4   :  { %v3885_v45 = vpop.eup %2022  ;;  %2048 = vrcp.f32 %v1435_v4 }
 0x2a5   :  { %v3888_v9 = vpop.eup %2024  ;;  %2050 = vrcp.f32 %v1436_v7 }
 0x2a6   :  { %v3891_v30 = vpop.eup %2026  ;;  %2052 = vrcp.f32 %v1437_v50 }
 0x2a7   :  { %v3894_v18 = vpop.eup %2028  ;;  %2054 = vrcp.f32 %v1438_v54  ;;  %v1448_v54 = vadd.f32 1.0, %v3792_v42 }
 0x2a8   :  { %v3897_v35 = vpop.eup %2030  ;;  %2056 = vrcp.f32 %v1439_v5  ;;  %v1449_v5 = vadd.f32 1.0, %v3799_v46  ;;  %v1452_v46 = vadd.f32 1.0, %v3820_v16  ;;  %v1454_v16 = vadd.f32 1.0, %v3834_v10 }
 0x2a9   :  { %v3900_v55 = vpop.eup %2032  ;;  %2058 = vrcp.f32 %v1440_v58  ;;  %v1456_v10 = vadd.f32 1.0, %v3844_v57  ;;  %v1458_v57 = vadd.f32 1.0, %v3850_v21  ;;  %v1460_v21 = vadd.f32 1.0, %v3855_v13 }
 0x2aa   :  { %v3903_v33 = vpop.eup %2034  ;;  %2060 = vrcp.f32 %v1441_v23  ;;  %v1450_v23 = vadd.f32 1.0, %v3806_v59  ;;  %v1453_v59 = vadd.f32 1.0, %v3827_v44  ;;  %v1455_v44 = vadd.f32 1.0, %v3841_v63 }
 0x2ab   :  { %v3906_v4 = vpop.eup %2036  ;;  %2062 = vrcp.f32 %v1442_v61  ;;  %v1457_v63 = vadd.f32 1.0, %v3847_v28  ;;  %v1459_v28 = vadd.f32 1.0, %v3853_v0  ;;  %v1461_v0 = vadd.f32 1.0, %v3857_v43 }
 0x2ac   :  { %v3909_v7 = vpop.eup %2038  ;;  %2064 = vrcp.f32 %v1443_v62  ;;  %v1462_v13 = vadd.f32 1.0, %v3859_v47  ;;  %v1463_v43 = vadd.f32 1.0, %v3861_v37  ;;  %v1464_v47 = vadd.f32 1.0, %v3864_v51 }
 0x2ad   :  { %v2041_v50 = vpop.eup %2040  ;;  %2066 = vrcp.f32 %v1444_v38  ;;  %v1465_v37 = vadd.f32 1.0, %v3867_v60  ;;  %v1466_v51 = vadd.f32 1.0, %v3870_v24  ;;  %v1467_v60 = vadd.f32 1.0, %v3873_v20 }
 0x2ae   :  { %v2043_v39 = vpop.eup %2042  ;;  %2068 = vrcp.f32 %v1445_v29  ;;  %v1578_v36 = vmul.f32 %v2041_v50, %v3514_v2  ;;  %v4241_v2 = vld [vmem:[#allocation2_spill] sm:$0xff]  ;;  %v1468_v24 = vadd.f32 1.0, %v3876_v8  ;;  %v1469_v20 = vadd.f32 1.0, %v3879_v32 }
 0x2af   :  { %v2045_v58 = vpop.eup %2044  ;;  %2070 = vrcp.f32 %v1446_v34  ;;  %v1579_v26 = vmul.f32 %v2043_v39, %v3521_v17  ;;  %v4243_v34 = vld [vmem:[#allocation4_spill] sm:$0xff]  ;;  %v1470_v8 = vadd.f32 1.0, %v3882_v52  ;;  %v1471_v32 = vadd.f32 1.0, %v3885_v45 }
 0x2b0   :  { %v2047_v61 = vpop.eup %2046  ;;  %2072 = vrcp.f32 %v1447_v11  ;;  %v1580_v62 = vmul.f32 %v2045_v58, %v3524_v12  ;;  %1627 = vst [vmem:[%s4143_s3] sm:$0xff] %v1578_v36  ;;  %v1472_v52 = vadd.f32 1.0, %v3888_v9  ;;  %v1473_v45 = vadd.f32 1.0, %v3891_v30 }
 0x2b1   :  { %v2049_v42 = vpop.eup %2048  ;;  %2074 = vrcp.f32 %v1448_v54  ;;  %v1581_v38 = vmul.f32 %v2047_v61, %v4241_v2  ;;  %1628 = vst [vmem:[%s4143_s3 + $0x8] sm:$0xff] %v1579_v26  ;;  %v1474_v9 = vadd.f32 1.0, %v3894_v18  ;;  %v1475_v30 = vadd.f32 1.0, %v3897_v35 }
 0x2b2   :  { %v2051_v17 = vpop.eup %2050  ;;  %2076 = vrcp.f32 %v1449_v5  ;;  %v1582_v12 = vmul.f32 %v2049_v42, %v4242_v3  ;;  %1629 = vst [vmem:[%s4143_s3 + $0x10] sm:$0xff] %v1580_v62  ;;  %v4244_v5 = vld [vmem:[#allocation5_spill] sm:$0xff]  ;;  %v1476_v18 = vadd.f32 1.0, %v3900_v55  ;;  %v1477_v35 = vadd.f32 1.0, %v3903_v33 }
 0x2b3   :  { %v2053_v29 = vpop.eup %2052  ;;  %2078 = vrcp.f32 %v1450_v23  ;;  %v1583_v11 = vmul.f32 %v2051_v17, %v4243_v34  ;;  %1630 = vst [vmem:[%s4143_s3 + $0x18] sm:$0xff] %v1581_v38  ;;  %v4246_v34 = vld [vmem:[#allocation7_spill] sm:$0xff]  ;;  %v1478_v55 = vadd.f32 1.0, %v3906_v4  ;;  %v1479_v33 = vadd.f32 1.0, %v3909_v7  ;;  %v4256_v4 = vld [vmem:[#allocation17_spill] sm:$0xff] }
 0x2b4   :  { %v2055_v50 = vpop.eup %2054  ;;  %2080 = vrcp.f32 %v1451_v27  ;;  %v1584_v54 = vmul.f32 %v2053_v29, %v3564_v41  ;;  %1631 = vst [vmem:[%s4143_s3 + $0x20] sm:$0xff] %v1582_v12  ;;  %v4245_v29 = vld [vmem:[#allocation6_spill] sm:$0xff] }
 0x2b5   :  { %v2057_v39 = vpop.eup %2056  ;;  %2082 = vrcp.f32 %v1452_v46  ;;  %v1585_v36 = vmul.f32 %v2055_v50, %v4244_v5  ;;  %1632 = vst [vmem:[%s4143_s3 + $0x28] sm:$0xff] %v1583_v11  ;;  %v4247_v50 = vld [vmem:[#allocation8_spill] sm:$0xff] }
 0x2b6   :  { %v2059_v58 = vpop.eup %2058  ;;  %2084 = vrcp.f32 %v1453_v59  ;;  %v1586_v41 = vmul.f32 %v2057_v39, %v3586_v49  ;;  %1633 = vst [vmem:[%s4143_s3 + $0x30] sm:$0xff] %v1584_v54  ;;  %v4248_v39 = vld [vmem:[#allocation9_spill] sm:$0xff] }
 0x2b7   :  { %v2061_v23 = vpop.eup %2060  ;;  %2086 = vrcp.f32 %v1454_v16  ;;  %v1587_v26 = vmul.f32 %v2059_v58, %v3598_v22  ;;  %1634 = vst [vmem:[%s4143_s3 + $0x38] sm:$0xff] %v1585_v36  ;;  %v4249_v36 = vld [vmem:[#allocation10_spill] sm:$0xff] }
 0x2b8   :  { %v2063_v61 = vpop.eup %2062  ;;  %2088 = vrcp.f32 %v1455_v44  ;;  %v1588_v49 = vmul.f32 %v2061_v23, %v3602_v31  ;;  %1635 = vst [vmem:[%s4143_s3 + $0x40] sm:$0xff] %v1586_v41  ;;  %v4250_v41 = vld [vmem:[#allocation11_spill] sm:$0xff] }
 0x2b9   :  { %v2065_v27 = vpop.eup %2064  ;;  %2090 = vrcp.f32 %v1456_v10  ;;  %v1589_v22 = vmul.f32 %v2063_v61, %v3607_v25  ;;  %1636 = vst [vmem:[%s4143_s3 + $0x48] sm:$0xff] %v1587_v26  ;;  %v4251_v26 = vld [vmem:[#allocation12_spill] sm:$0xff] }
 0x2ba   :  { %v2067_v62 = vpop.eup %2066  ;;  %2092 = vrcp.f32 %v1457_v63  ;;  %v1590_v31 = vmul.f32 %v2065_v27, %v3610_v1  ;;  %1637 = vst [vmem:[%s4143_s3 + $0x50] sm:$0xff] %v1588_v49  ;;  %v4252_v49 = vld [vmem:[#allocation13_spill] sm:$0xff] }
 0x2bb   :  { %v2069_v42 = vpop.eup %2068  ;;  %2094 = vrcp.f32 %v1458_v57  ;;  %v1591_v25 = vmul.f32 %v2067_v62, %v3615_v53  ;;  %1638 = vst [vmem:[%s4143_s3 + $0x58] sm:$0xff] %v1589_v22  ;;  %v4253_v22 = vld [vmem:[#allocation14_spill] sm:$0xff] }
 0x2bc   :  { %v2071_v46 = vpop.eup %2070  ;;  %2096 = vrcp.f32 %v1459_v28  ;;  %v1592_v1 = vmul.f32 %v2069_v42, %v3620_v19  ;;  %1639 = vst [vmem:[%s4143_s3 + $0x60] sm:$0xff] %v1590_v31  ;;  %v4254_v31 = vld [vmem:[#allocation15_spill] sm:$0xff] }
 0x2bd   :  { %v2073_v2 = vpop.eup %2072  ;;  %2098 = vrcp.f32 %v1460_v21  ;;  %v1593_v53 = vmul.f32 %v2071_v46, %v3625_v6  ;;  %1640 = vst [vmem:[%s4143_s3 + $0x68] sm:$0xff] %v1591_v25  ;;  %v4255_v25 = vld [vmem:[#allocation16_spill] sm:$0xff] }
 0x2be   :  { %v2075_v38 = vpop.eup %2074  ;;  %2100 = vrcp.f32 %v1461_v0  ;;  %v1594_v19 = vmul.f32 %v2073_v2, %v3630_v15  ;;  %1641 = vst [vmem:[%s4143_s3 + $0x70] sm:$0xff] %v1592_v1 }
 0x2bf   :  { %v2077_v17 = vpop.eup %2076  ;;  %2102 = vrcp.f32 %v1462_v13  ;;  %v1595_v6 = vmul.f32 %v2075_v38, %v3635_v56  ;;  %1642 = vst [vmem:[%s4143_s3 + $0x78] sm:$0xff] %v1593_v53  ;;  %v4258_v38 = vld [vmem:[#allocation19_spill] sm:$0xff] }
 0x2c0   :  { %v2079_v59 = vpop.eup %2078  ;;  %2104 = vrcp.f32 %v1463_v43  ;;  %v1596_v15 = vmul.f32 %v2077_v17, %v3640_v14  ;;  %1643 = vst [vmem:[%s4143_s3 + $0x80] sm:$0xff] %v1594_v19  ;;  %v4259_v17 = vld [vmem:[#allocation20_spill] sm:$0xff] }
 0x2c1   :  { %v2081_v3 = vpop.eup %2080  ;;  %2106 = vrcp.f32 %v1464_v47  ;;  %v1597_v56 = vmul.f32 %v2079_v59, %v3645_v40  ;;  %1644 = vst [vmem:[%s4143_s3 + $0x88] sm:$0xff] %v1595_v6  ;;  %v4257_v47 = vld [vmem:[#allocation18_spill] sm:$0xff]  ;;  %v4260_v59 = vld [vmem:[#allocation21_spill] sm:$0xff] }
 0x2c2   :  { %v2083_v12 = vpop.eup %2082  ;;  %2108 = vrcp.f32 %v1465_v37  ;;  %v1598_v14 = vmul.f32 %v2081_v3, %v4245_v29  ;;  %1645 = vst [vmem:[%s4143_s3 + $0x90] sm:$0xff] %v1596_v15  ;;  %v4261_v3 = vld [vmem:[#allocation22_spill] sm:$0xff] }
 0x2c3   :  { %v2085_v16 = vpop.eup %2084  ;;  %2110 = vrcp.f32 %v1466_v51  ;;  %v1599_v40 = vmul.f32 %v2083_v12, %v4246_v34  ;;  %1646 = vst [vmem:[%s4143_s3 + $0x98] sm:$0xff] %v1597_v56  ;;  %v4262_v12 = vld [vmem:[#allocation23_spill] sm:$0xff]  ;;  %v4264_v34 = vld [vmem:[#allocation25_spill] sm:$0xff] }
 0x2c4   :  { %v2087_v11 = vpop.eup %2086  ;;  %2112 = vrcp.f32 %v1467_v60  ;;  %v1600_v44 = vmul.f32 %v2085_v16, %v4247_v50  ;;  %1647 = vst [vmem:[%s4143_s3 + $0xa0] sm:$0xff] %v1598_v14  ;;  %v4263_v14 = vld [vmem:[#allocation24_spill] sm:$0xff] }
 0x2c5   :  { %v2089_v54 = vpop.eup %2088  ;;  %2114 = vrcp.f32 %v1468_v24  ;;  %v1601_v10 = vmul.f32 %v2087_v11, %v4248_v39  ;;  %1648 = vst [vmem:[%s4143_s3 + $0xa8] sm:$0xff] %v1599_v40 }
 0x2c6   :  { %v2091_v5 = vpop.eup %2090  ;;  %2116 = vrcp.f32 %v1469_v20  ;;  %v1602_v58 = vmul.f32 %v2089_v54, %v4249_v36  ;;  %1649 = vst [vmem:[%s4143_s3 + $0xb0] sm:$0xff] %v1600_v44  ;;  %v4266_v54 = vld [vmem:[#allocation27_spill] sm:$0xff]  ;;  %v4268_v36 = vld [vmem:[#allocation29_spill] sm:$0xff] }
 0x2c7   :  { %v2093_v63 = vpop.eup %2092  ;;  %2118 = vrcp.f32 %v1470_v8  ;;  %v1603_v23 = vmul.f32 %v2091_v5, %v4250_v41  ;;  %1650 = vst [vmem:[%s4143_s3 + $0xb8] sm:$0xff] %v1601_v10  ;;  %v4267_v10 = vld [vmem:[#allocation28_spill] sm:$0xff] }
 0x2c8   :  { %v2095_v57 = vpop.eup %2094  ;;  %2120 = vrcp.f32 %v1471_v32  ;;  %v1604_v61 = vmul.f32 %v2093_v63, %v4251_v26  ;;  %1651 = vst [vmem:[%s4143_s3 + $0xc0] sm:$0xff] %v1602_v58  ;;  %v4265_v32 = vld [vmem:[#allocation26_spill] sm:$0xff] }
 0x2c9   :  { %v2097_v28 = vpop.eup %2096  ;;  %2122 = vrcp.f32 %v1472_v52  ;;  %v1605_v27 = vmul.f32 %v2095_v57, %v4252_v49  ;;  %1652 = vst [vmem:[%s4143_s3 + $0xc8] sm:$0xff] %v1603_v23  ;;  %v4270_v57 = vld [vmem:[#allocation31_spill] sm:$0xff]  ;;  %v4272_v49 = vld [vmem:[#allocation33_spill] sm:$0xff] }
 0x2ca   :  { %v2099_v21 = vpop.eup %2098  ;;  %2124 = vrcp.f32 %v1473_v45  ;;  %v1606_v62 = vmul.f32 %v2097_v28, %v4253_v22  ;;  %1653 = vst [vmem:[%s4143_s3 + $0xd0] sm:$0xff] %v1604_v61  ;;  %v4271_v61 = vld [vmem:[#allocation32_spill] sm:$0xff] }
 0x2cb   :  { %v2101_v0 = vpop.eup %2100  ;;  %2126 = vrcp.f32 %v1474_v9  ;;  %v1607_v42 = vmul.f32 %v2099_v21, %v4254_v31  ;;  %1654 = vst [vmem:[%s4143_s3 + $0xd8] sm:$0xff] %v1605_v27  ;;  %v4269_v9 = vld [vmem:[#allocation30_spill] sm:$0xff] }
 0x2cc   :  { %v2103_v13 = vpop.eup %2102  ;;  %2128 = vrcp.f32 %v1475_v30  ;;  %v1608_v46 = vmul.f32 %v2101_v0, %v4255_v25  ;;  %1655 = vst [vmem:[%s4143_s3 + $0xe0] sm:$0xff] %v1606_v62 }
 0x2cd   :  { %v2105_v43 = vpop.eup %2104  ;;  %2130 = vrcp.f32 %v1476_v18  ;;  %v1609_v1 = vmul.f32 %v2103_v13, %v4256_v4  ;;  %1656 = vst [vmem:[%s4143_s3 + $0xe8] sm:$0xff] %v1607_v42 }
 0x2ce   :  { %v2107_v2 = vpop.eup %2106  ;;  %2132 = vrcp.f32 %v1477_v35  ;;  %v1610_v53 = vmul.f32 %v2105_v43, %v4257_v47  ;;  %1657 = vst [vmem:[%s4143_s3 + $0xf0] sm:$0xff] %v1608_v46 }
 0x2cf   :  { %v2109_v7 = vpop.eup %2108  ;;  %2134 = vrcp.f32 %v1478_v55  ;;  %v1611_v37 = vmul.f32 %v2107_v2, %v4258_v38  ;;  %1658 = vst [vmem:[%s4143_s3 + $0xf8] sm:$0xff] %v1609_v1 }
 0x2d0   :  { %v2111_v19 = vpop.eup %2110  ;;  %2136 = vrcp.f32 %v1479_v33  ;;  %v1612_v51 = vmul.f32 %v2109_v7, %v4259_v17  ;;  %1659 = vst [vmem:[%s4143_s3 + $0x100] sm:$0xff] %v1610_v53 }
 0x2d1   :  { %v2113_v6 = vpop.eup %2112  ;;  %v1613_v60 = vmul.f32 %v2111_v19, %v4260_v59  ;;  %1660 = vst [vmem:[%s4143_s3 + $0x108] sm:$0xff] %v1611_v37 }
 0x2d2   :  { %v2115_v15 = vpop.eup %2114  ;;  %v1614_v24 = vmul.f32 %v2113_v6, %v4261_v3  ;;  %1661 = vst [vmem:[%s4143_s3 + $0x110] sm:$0xff] %v1612_v51 }
 0x2d3   :  { %v2117_v56 = vpop.eup %2116  ;;  %v1615_v20 = vmul.f32 %v2115_v15, %v4262_v12  ;;  %1662 = vst [vmem:[%s4143_s3 + $0x118] sm:$0xff] %v1613_v60 }
 0x2d4   :  { %v2119_v29 = vpop.eup %2118  ;;  %v1616_v16 = vmul.f32 %v2117_v56, %v4263_v14  ;;  %1663 = vst [vmem:[%s4143_s3 + $0x120] sm:$0xff] %v1614_v24 }
 0x2d5   :  { %v2121_v8 = vpop.eup %2120  ;;  %v1617_v40 = vmul.f32 %v2119_v29, %v4264_v34  ;;  %1664 = vst [vmem:[%s4143_s3 + $0x128] sm:$0xff] %v1615_v20 }
 0x2d6   :  { %v2123_v11 = vpop.eup %2122  ;;  %v1618_v50 = vmul.f32 %v2121_v8, %v4265_v32  ;;  %1665 = vst [vmem:[%s4143_s3 + $0x130] sm:$0xff] %v1616_v16 }
 0x2d7   :  { %v2125_v44 = vpop.eup %2124  ;;  %v1619_v52 = vmul.f32 %v2123_v11, %v4266_v54  ;;  %1666 = vst [vmem:[%s4143_s3 + $0x138] sm:$0xff] %v1617_v40 }
 0x2d8   :  { %v2127_v39 = vpop.eup %2126  ;;  %v1620_v5 = vmul.f32 %v2125_v44, %v4267_v10  ;;  %1667 = vst [vmem:[%s4143_s3 + $0x140] sm:$0xff] %v1618_v50 }
 0x2d9   :  { %v2129_v45 = vpop.eup %2128  ;;  %v1621_v58 = vmul.f32 %v2127_v39, %v4268_v36  ;;  %1668 = vst [vmem:[%s4143_s3 + $0x148] sm:$0xff] %v1619_v52 }
 0x2da   :  { %v2131_v63 = vpop.eup %2130  ;;  %v1622_v41 = vmul.f32 %v2129_v45, %v4269_v9  ;;  %1669 = vst [vmem:[%s4143_s3 + $0x150] sm:$0xff] %v1620_v5 }
 0x2db   :  { %v2133_v23 = vpop.eup %2132  ;;  %v1623_v30 = vmul.f32 %v2131_v63, %v4270_v57  ;;  %1670 = vst [vmem:[%s4143_s3 + $0x158] sm:$0xff] %v1621_v58 }
 0x2dc   :  { %v2135_v26 = vpop.eup %2134  ;;  %v1624_v28 = vmul.f32 %v2133_v23, %v4271_v61  ;;  %1671 = vst [vmem:[%s4143_s3 + $0x160] sm:$0xff] %v1622_v41 }
 0x2dd   :  { %v2137_v18 = vpop.eup %2136  ;;  %v1625_v27 = vmul.f32 %v2135_v26, %v4272_v49  ;;  %1672 = vst [vmem:[%s4143_s3 + $0x168] sm:$0xff] %v1623_v30 }
 0x2de   :  { %v1626_v21 = vmul.f32 %v2137_v18, %v3838_v48  ;;  %1673 = vst [vmem:[%s4143_s3 + $0x170] sm:$0xff] %v1624_v28 }
 0x2df   :  { %1674 = vst [vmem:[%s4143_s3 + $0x178] sm:$0xff] %v1625_v27 }
 0x2e0   :  { %1675 = vst [vmem:[%s4143_s3 + $0x180] sm:$0xff] %v1626_v21 }

</bundles_post_ra>
